<compile_context>
chip_gen: v6e
topology: v6e:2x2x1
jax: 0.10.0
libtpu: 0.0.40
codegen_flags: <defaults>
</compile_context>

<pallas_src>
import functools

import jax
import jax.numpy as jnp
from jax import lax
from jax.experimental import pallas as pl
from jax.experimental.pallas import tpu as pltpu


def _softplus(y):
    # Matches torch.nn.Softplus(beta=1, threshold=20): identity above threshold.
    return jnp.where(y > 20.0, y, jnp.log1p(jnp.exp(jnp.minimum(y, 20.0))))


def _pick_tile(dim, target):
    """Largest multiple of 128 dividing `dim` that is <= target, else full dim."""
    if dim <= target or dim % 128 != 0:
        return dim  # full-extent block (VMEM budget is checked by the caller)
    t = (min(target, dim) // 128) * 128
    while t > 128 and dim % t != 0:
        t -= 128
    return t if dim % t == 0 else dim


def _fused_kernel(*refs, enc_chunks, tk, mid_flags, compute_dtype):
    n_mid = len(mid_flags)
    x_ref, w1_ref, s1_ref, b1_ref = refs[:4]
    mid_refs = refs[4:4 + 2 * n_mid]
    wl_ref, sl_ref, bl_ref, o_ref = refs[4 + 2 * n_mid:8 + 2 * n_mid]
    acc_ref = refs[8 + 2 * n_mid]   # (B, H0) f32 encoder accumulator
    h_ref = refs[9 + 2 * n_mid]     # (B, H0) f32 decoder input activation

    i = pl.program_id(0)

    # ---- phase 1: first (wide-IN) encoder layer, streamed over K chunks ----
    @pl.when(i == 0)
    def _():
        acc_ref[...] = jnp.zeros_like(acc_ref)

    @pl.when(i < enc_chunks)
    def _():
        k0 = pl.multiple_of(i * tk, tk)
        xc = x_ref[:, pl.ds(k0, tk)].astype(compute_dtype)
        # int8 weight tiles are converted to bf16 on the VPU (lossless for
        # [-127,127]); bf16 tiles pass through unchanged.
        acc_ref[...] += jnp.dot(xc, w1_ref[...].astype(compute_dtype),
                                preferred_element_type=jnp.float32)

    # ---- phase 1 epilogue: dequant scale + bias + softplus + tiny mid layers
    @pl.when(i == enc_chunks - 1)
    def _():
        a = _softplus(acc_ref[...] * s1_ref[...] + b1_ref[...])
        for li in range(n_mid):
            w_ref = mid_refs[2 * li]
            b_ref = mid_refs[2 * li + 1]
            # Tiny middle layers: bf16 operands, f32 accumulation (matches the
            # pure-JAX reference exactly; see review concern on f32 parity).
            a = jnp.dot(a.astype(compute_dtype), w_ref[...],
                        preferred_element_type=jnp.float32) + b_ref[...]
            if mid_flags[li]:
                a = _softplus(a)
        h_ref[...] = a

    # ---- phase 2: last (wide-OUT) decoder layer, streamed over N chunks ----
    # NOTE: o_ref's block index is clamped to 0 during the encoder phase; the
    # block is only written back to HBM when its index changes, and the first
    # change happens only AFTER step i == enc_chunks (where the block is first
    # written in-kernel), so no stale data ever reaches HBM.
    @pl.when(i >= enc_chunks)
    def _():
        wt = wl_ref[...].astype(compute_dtype)                # (tn, H0)
        y = lax.dot_general(h_ref[...].astype(compute_dtype), wt,
                            (((1,), (1,)), ((), ())),
                            preferred_element_type=jnp.float32)  # (B, tn)
        o_ref[...] = (y * sl_ref[...] + bl_ref[...]).astype(o_ref.dtype)


def autoencoder_forward(x, first, mids, last, *, stream_tile=8192,
                        compute_dtype=jnp.bfloat16):
    """Whole autoencoder forward as ONE fused pallas_call.

    first = (w1 (IN,H0) {bf16|int8}, s1 (1,H0) f32, b1 (1,H0) f32)
    mids  = [(w (din,dout) bf16, b (1,dout) f32, apply_softplus), ...]
    last  = (wl_t (OUT,H0) {bf16|int8}, sl (1,OUT) f32, bl (1,OUT) f32)
    """
    w1, s1, b1 = first
    wl_t, sl, bl = last
    B, IN = x.shape
    IN_w, H0 = w1.shape
    OUT, H0_w = wl_t.shape
    assert IN == IN_w and H0 == H0_w

    tk = _pick_tile(IN, stream_tile)
    tn = _pick_tile(OUT, stream_tile)
    assert IN % tk == 0 and OUT % tn == 0
    enc_chunks = IN // tk
    dec_chunks = OUT // tn

    mid_flags = tuple(bool(f) for (_, _, f) in mids)
    w_itemsize = jnp.dtype(w1.dtype).itemsize

    # ---- explicit VMEM budget (per perf review) -----------------------------
    def _vmem_estimate(nbuf_big):
        est = 2 * B * IN * 4                        # x fully resident (dbl buffered)
        est += nbuf_big * tk * H0 * w_itemsize      # streamed w1 tiles
        est += nbuf_big * tn * H0 * w_itemsize      # streamed wl tiles
        est += 2 * 2 * H0 * 4                       # s1, b1
        est += 2 * 2 * tn * 4                       # sl, bl tiles
        for (w, b, _f) in mids:
            est += 2 * (w.size * jnp.dtype(w.dtype).itemsize + b.size * 4)
        est += 2 * B * tn * 4                       # output tile
        est += 2 * B * H0 * 4                       # acc + h scratch
        return int(est)

    est = _vmem_estimate(3)
    if est + (est // 4) > 60 * 2**20:
        raise ValueError(
            "Fused autoencoder kernel would need ~%d MiB of VMEM; lower "
            "stream_tile (a space_dim that is not a multiple of 128 forces a "
            "full-extent weight block)." % (est >> 20))
    vmem_limit = int(min(max(est + est // 4, 24 * 2**20), 60 * 2**20))

    # ---- cost estimate so XLA can overlap neighbours with this mem-bound call
    flops = 2 * B * IN * H0 + 2 * B * H0 * OUT
    transcendentals = 2 * B * H0
    bytes_accessed = (x.size * jnp.dtype(x.dtype).itemsize
                      + B * OUT * jnp.dtype(x.dtype).itemsize
                      + w1.size * w_itemsize + wl_t.size * w_itemsize
                      + (s1.size + b1.size + sl.size + bl.size) * 4)
    for (w, b, f) in mids:
        flops += 2 * B * w.shape[0] * w.shape[1]
        if f:
            transcendentals += 2 * B * w.shape[1]
        bytes_accessed += w.size * jnp.dtype(w.dtype).itemsize + b.size * 4
    cost = pl.CostEstimate(flops=int(flops), transcendentals=int(transcendentals),
                           bytes_accessed=int(bytes_accessed))

    kernel = functools.partial(_fused_kernel, enc_chunks=enc_chunks, tk=tk,
                               mid_flags=mid_flags, compute_dtype=compute_dtype)

    def _make_spec(shape, index_map, depth):
        if depth is not None:
            return pl.BlockSpec(shape, index_map, pipeline_mode=pl.Buffered(depth))
        return pl.BlockSpec(shape, index_map)

    def _run(buffered):
        depth_enc = 3 if (buffered and enc_chunks >= 4) else None
        depth_dec = 3 if (buffered and dec_chunks >= 4) else None

        in_args = [x, w1, s1, b1]
        in_specs = [
            # x fully resident in VMEM (B x IN is small); sliced with pl.ds.
            pl.BlockSpec((B, IN), lambda i: (0, 0)),
            # First-layer weight streamed over K; index clamped so it never
            # re-DMAs during the decoder phase.
            _make_spec((tk, H0), lambda i: (jnp.minimum(i, enc_chunks - 1), 0),
                       depth_enc),
            pl.BlockSpec((1, H0), lambda i: (0, 0)),
            pl.BlockSpec((1, H0), lambda i: (0, 0)),
        ]
        for (w, b, _f) in mids:
            in_args += [w, b]
            in_specs += [pl.BlockSpec(w.shape, lambda i: (0, 0)),
                         pl.BlockSpec(b.shape, lambda i: (0, 0))]
        dec_row = lambda i: (jnp.maximum(i - enc_chunks, 0), 0)
        dec_col = lambda i: (0, jnp.maximum(i - enc_chunks, 0))
        in_args += [wl_t, sl, bl]
        in_specs += [
            # Pre-transposed (OUT, H0) decoder weight: each (tn, H0) tile is a
            # single contiguous HBM read; clamped to tile 0 in the encoder
            # phase (acts as a free prefetch of the first decoder tile).
            _make_spec((tn, H0), dec_row, depth_dec),
            pl.BlockSpec((1, tn), dec_col),
            pl.BlockSpec((1, tn), dec_col),
        ]
        out_spec = pl.BlockSpec((B, tn), dec_col)

        return pl.pallas_call(
            kernel,
            out_shape=jax.ShapeDtypeStruct((B, OUT), x.dtype),
            grid_spec=pltpu.PrefetchScalarGridSpec(
                num_scalar_prefetch=0,
                grid=(enc_chunks + dec_chunks,),
                in_specs=in_specs,
                out_specs=out_spec,
                scratch_shapes=[
                    pltpu.VMEM((B, H0), jnp.float32),   # encoder accumulator
                    pltpu.VMEM((B, H0), jnp.float32),   # decoder input act
                ],
            ),
            compiler_params=pltpu.CompilerParams(
                # Single sequential axis: encoder K-reduction, then decoder
                # N-sweep.  (Dual-TC split: see TODO(synk) at top.)
                dimension_semantics=("arbitrary",),
                vmem_limit_bytes=vmem_limit,
            ),
            cost_estimate=cost,
        )(*in_args)

    want_buffered = (enc_chunks >= 4 or dec_chunks >= 4) and hasattr(pl, "Buffered")
    if want_buffered:
        try:
            return _run(True)
        except Exception:  # pipeline_mode unsupported on this jax/libtpu -> fallback
            pass
    return _run(False)


class AutoencoderPallas:
    """Mirror of the PyTorch Autoencoder forward (Linear + Softplus stack).

    Weights are stored pre-transposed so the forward is y = x @ W + b.  The two
    wide layers (space_dim x H0 and H0 x space_dim) are stored in a compact HBM
    dtype (bf16 by default, optional per-output-channel int8) with f32
    scale/bias applied in the kernel epilogues; matmuls accumulate in f32.
    """

    def __init__(self, space_dim, hidden_units, n_z, key, weight_quant="bf16"):
        assert weight_quant in ("bf16", "int8")
        hidden_units = list(hidden_units)
        enc_dims = [space_dim] + hidden_units + [n_z]
        dec_dims = [n_z] + hidden_units[::-1] + [space_dim]

        def init_layer(k, fan_in, fan_out):
            # PyTorch nn.Linear default: U(-1/sqrt(fan_in), 1/sqrt(fan_in))
            kw, kb = jax.random.split(k)
            bound = 1.0 / float(fan_in) ** 0.5
            w = jax.random.uniform(kw, (fan_in, fan_out), jnp.float32, -bound, bound)
            b = jax.random.uniform(kb, (fan_out,), jnp.float32, -bound, bound)
            return w, b

        n_enc = len(enc_dims) - 1
        n_dec = len(dec_dims) - 1
        keys = jax.random.split(key, n_enc + n_dec)

        # Flat forward-order list of (w_f32 (in,out), b_f32 (out,), softplus?).
        layers = []
        for i in range(n_enc):
            act = i != n_enc - 1            # no softplus on the bottleneck layer
            w, b = init_layer(keys[i], enc_dims[i], enc_dims[i + 1])
            layers.append((w, b, act))
        for i in range(n_dec):
            act = i != n_dec - 1            # no softplus on the reconstruction layer
            w, b = init_layer(keys[n_enc + i], dec_dims[i], dec_dims[i + 1])
            layers.append((w, b, act))

        w1, b1, act1 = layers[0]
        wl, bl, actl = layers[-1]
        assert act1 and not actl

        if weight_quant == "int8":
            # Per-output-channel symmetric int8; scales folded into the kernel
            # epilogue (after the f32 accumulate, before bias/softplus).
            a1 = jnp.maximum(jnp.max(jnp.abs(w1), axis=0, keepdims=True), 1e-12)
            self.s1 = a1 / 127.0                                           # (1, H0)
            self.w1 = jnp.clip(jnp.round(w1 / self.s1), -127, 127).astype(jnp.int8)
            wl_t = wl.T                                                    # (OUT, H0)
            al = jnp.maximum(jnp.max(jnp.abs(wl_t), axis=1, keepdims=True), 1e-12)
            self.sl = (al / 127.0).reshape(1, -1)                          # (1, OUT)
            self.wl_t = jnp.clip(jnp.round(wl_t / (al / 127.0)),
                                 -127, 127).astype(jnp.int8)
        else:
            self.s1 = jnp.ones((1, w1.shape[1]), jnp.float32)
            self.w1 = w1.astype(jnp.bfloat16)
            self.sl = jnp.ones((1, wl.shape[1]), jnp.float32)
            self.wl_t = wl.T.astype(jnp.bfloat16)

        self.b1 = b1.reshape(1, -1)
        self.bl = bl.reshape(1, -1)
        # Tiny middle layers: bf16 weights, f32 biases (traffic is negligible).
        self.mids = [(w.astype(jnp.bfloat16), b.reshape(1, -1), act)
                     for (w, b, act) in layers[1:-1]]

    def __call__(self, x, *, stream_tile=8192):
        return autoencoder_forward(
            x,
            (self.w1, self.s1, self.b1),
            self.mids,
            (self.wl_t, self.sl, self.bl),
            stream_tile=stream_tile)


def _reference_forward(model, x, compute_dtype=jnp.bfloat16):
    """Pure-JAX reference using the exact same stored weights / numerics."""
    a = jnp.dot(x.astype(compute_dtype), model.w1.astype(compute_dtype),
                preferred_element_type=jnp.float32)
    a = _softplus(a * model.s1 + model.b1)
    for (w, b, act) in model.mids:
        a = jnp.dot(a.astype(compute_dtype), w,
                    preferred_element_type=jnp.float32) + b
        if act:
            a = _softplus(a)
    y = jnp.dot(a.astype(compute_dtype), model.wl_t.astype(compute_dtype).T,
                preferred_element_type=jnp.float32)
    return y * model.sl + model.bl


if __name__ == "__main__":
    # Small shapes consistent with the module (the real run uses
    # space_dim=16384, hidden_units=[128, 64], n_z=8).
    space_dim = 2048
    hidden_units = [128, 64]
    n_z = 8
    batch = 8

    key = jax.random.PRNGKey(0)
    k_param, k_x = jax.random.split(key)
    x = jax.random.normal(k_x, (batch, space_dim), jnp.float32)

    model = AutoencoderPallas(space_dim, hidden_units, n_z, k_param)
    ref = _reference_forward(model, x)

    # Default path: big stream tiles -> degenerate 2-step grid at these shapes.
    out = jax.block_until_ready(model(x))
    assert out.shape == (batch, space_dim)
    assert jnp.allclose(out, ref, atol=2e-3, rtol=2e-3), float(
        jnp.max(jnp.abs(out - ref)))

    # Multi-chunk path: 4 encoder + 4 decoder steps (exercises triple-buffered
    # streamed weights and the clamped index maps).
    out2 = jax.block_until_ready(model(x, stream_tile=512))
    assert jnp.allclose(out2, ref, atol=2e-3, rtol=2e-3), float(
        jnp.max(jnp.abs(out2 - ref)))

    # Optional int8 weight path (per-output-channel scales in the epilogue).
    model_q = AutoencoderPallas(space_dim, hidden_units, n_z, k_param,
                                weight_quant="int8")
    ref_q = _reference_forward(model_q, x)
    out_q = jax.block_until_ready(model_q(x, stream_tile=512))
    assert jnp.allclose(out_q, ref_q, atol=2e-3, rtol=2e-3), float(
        jnp.max(jnp.abs(out_q - ref_q)))

    print("KERNEL_OK")
</pallas_src>

<mosaic_0001>
module attributes {stable_mosaic.version = 11 : i64} {
  func.func @_fused_kernel(%arg0: i32, %arg1: memref<8x2048xf32, #tpu.memory_space<vmem>>, %arg2: memref<2048x128xbf16, #tpu.memory_space<vmem>>, %arg3: memref<1x128xf32, #tpu.memory_space<vmem>>, %arg4: memref<1x128xf32, #tpu.memory_space<vmem>>, %arg5: memref<128x64xbf16, #tpu.memory_space<vmem>>, %arg6: memref<1x64xf32, #tpu.memory_space<vmem>>, %arg7: memref<64x8xbf16, #tpu.memory_space<vmem>>, %arg8: memref<1x8xf32, #tpu.memory_space<vmem>>, %arg9: memref<8x64xbf16, #tpu.memory_space<vmem>>, %arg10: memref<1x64xf32, #tpu.memory_space<vmem>>, %arg11: memref<64x128xbf16, #tpu.memory_space<vmem>>, %arg12: memref<1x128xf32, #tpu.memory_space<vmem>>, %arg13: memref<2048x128xbf16, #tpu.memory_space<vmem>>, %arg14: memref<1x2048xf32, #tpu.memory_space<vmem>>, %arg15: memref<1x2048xf32, #tpu.memory_space<vmem>>, %arg16: memref<8x2048xf32, #tpu.memory_space<vmem>>, %arg17: memref<8x128xf32, #tpu.memory_space<vmem>>, %arg18: memref<8x128xf32, #tpu.memory_space<vmem>>) attributes {dimension_semantics = [#tpu.dimension_semantics<arbitrary>], iteration_bounds = array<i64: 2>, scalar_prefetch = 0 : i64, scratch_operands = 2 : i64, tpu.core_type = #tpu.core_type<tc>, window_params = [{pipeline_mode = #tpu.pipeline_mode<synchronous>, transform_indices = @transform_0, window_bounds = array<i64: 8, 2048>}, {transform_indices = @transform_1, window_bounds = array<i64: 2048, 128>}, {pipeline_mode = #tpu.pipeline_mode<synchronous>, transform_indices = @transform_2, window_bounds = array<i64: 1, 128>}, {pipeline_mode = #tpu.pipeline_mode<synchronous>, transform_indices = @transform_3, window_bounds = array<i64: 1, 128>}, {pipeline_mode = #tpu.pipeline_mode<synchronous>, transform_indices = @transform_4, window_bounds = array<i64: 128, 64>}, {pipeline_mode = #tpu.pipeline_mode<synchronous>, transform_indices = @transform_5, window_bounds = array<i64: 1, 64>}, {pipeline_mode = #tpu.pipeline_mode<synchronous>, transform_indices = @transform_6, window_bounds = array<i64: 64, 8>}, {pipeline_mode = #tpu.pipeline_mode<synchronous>, transform_indices = @transform_7, window_bounds = array<i64: 1, 8>}, {pipeline_mode = #tpu.pipeline_mode<synchronous>, transform_indices = @transform_8, window_bounds = array<i64: 8, 64>}, {pipeline_mode = #tpu.pipeline_mode<synchronous>, transform_indices = @transform_9, window_bounds = array<i64: 1, 64>}, {pipeline_mode = #tpu.pipeline_mode<synchronous>, transform_indices = @transform_10, window_bounds = array<i64: 64, 128>}, {pipeline_mode = #tpu.pipeline_mode<synchronous>, transform_indices = @transform_11, window_bounds = array<i64: 1, 128>}, {transform_indices = @transform_12, window_bounds = array<i64: 2048, 128>}, {transform_indices = @transform_13, window_bounds = array<i64: 1, 2048>}, {transform_indices = @transform_14, window_bounds = array<i64: 1, 2048>}, {transform_indices = @transform_15, window_bounds = array<i64: 8, 2048>}]} {
    %c0_i32 = arith.constant 0 : i32
    %0 = arith.cmpi eq, %arg0, %c0_i32 : i32
    %1 = arith.extui %0 : i1 to i32
    %c0_i32_0 = arith.constant 0 : i32
    %2 = arith.cmpi ne, %1, %c0_i32_0 : i32
    scf.if %2 {
      %cst = arith.constant 0.000000e+00 : f32
      %12 = vector.broadcast %cst : f32 to vector<8x128xf32>
      %c0 = arith.constant 0 : index
      %c0_6 = arith.constant 0 : index
      %13 = vector.load %arg17[%c0, %c0_6] : memref<8x128xf32, #tpu.memory_space<vmem>>, vector<8x128xf32>
      tpu.vector_store %arg17[%c0, %c0_6], %12 {strides = array<i32>} : memref<8x128xf32, #tpu.memory_space<vmem>>, vector<8x128xf32>,
    } else {
    }
    %c1_i32 = arith.constant 1 : i32
    %3 = arith.cmpi slt, %arg0, %c1_i32 : i32
    %4 = arith.extui %3 : i1 to i32
    %c0_i32_1 = arith.constant 0 : i32
    %5 = arith.cmpi ne, %4, %c0_i32_1 : i32
    scf.if %5 {
      %c2048_i32 = arith.constant 2048 : i32
      %12 = arith.muli %arg0, %c2048_i32 : i32
      %13 = tpu.assume_multiple %12, 2048 : i32
      %c0 = arith.constant 0 : index
      %14 = arith.index_cast %13 : i32 to index
      %15 = vector.load %arg1[%c0, %14] : memref<8x2048xf32, #tpu.memory_space<vmem>>, vector<8x2048xf32>
      %16 = arith.truncf %15 : vector<8x2048xf32> to vector<8x2048xbf16>
      %c0_6 = arith.constant 0 : index
      %c0_7 = arith.constant 0 : index
      %17 = vector.load %arg17[%c0_6, %c0_7] : memref<8x128xf32, #tpu.memory_space<vmem>>, vector<8x128xf32>
      %c0_8 = arith.constant 0 : index
      %c0_9 = arith.constant 0 : index
      %18 = vector.load %arg2[%c0_8, %c0_9] : memref<2048x128xbf16, #tpu.memory_space<vmem>>, vector<2048x128xbf16>
      %cst = arith.constant dense<0.000000e+00> : vector<8x128xf32>
      %19 = tpu.matmul %16, %18, %cst {dimension_numbers = #tpu.dot_dimension_numbers<[1], [0], [0], [1], [0, 0, 1, 1], [], []>} : vector<8x2048xbf16>, vector<2048x128xbf16>, vector<8x128xf32> -> vector<8x128xf32>
      %20 = arith.addf %17, %19 : vector<8x128xf32>
      %c0_10 = arith.constant 0 : index
      %c0_11 = arith.constant 0 : index
      %21 = vector.load %arg17[%c0_10, %c0_11] : memref<8x128xf32, #tpu.memory_space<vmem>>, vector<8x128xf32>
      tpu.vector_store %arg17[%c0_10, %c0_11], %20 {strides = array<i32>} : memref<8x128xf32, #tpu.memory_space<vmem>>, vector<8x128xf32>,
    } else {
    }
    %c0_i32_2 = arith.constant 0 : i32
    %6 = arith.cmpi eq, %arg0, %c0_i32_2 : i32
    %7 = arith.extui %6 : i1 to i32
    %c0_i32_3 = arith.constant 0 : i32
    %8 = arith.cmpi ne, %7, %c0_i32_3 : i32
    scf.if %8 {
      %c0 = arith.constant 0 : index
      %c0_6 = arith.constant 0 : index
      %12 = vector.load %arg17[%c0, %c0_6] : memref<8x128xf32, #tpu.memory_space<vmem>>, vector<8x128xf32>
      %c0_7 = arith.constant 0 : index
      %c0_8 = arith.constant 0 : index
      %13 = vector.load %arg3[%c0_7, %c0_8] : memref<1x128xf32, #tpu.memory_space<vmem>>, vector<1x128xf32>
      %14 = vector.broadcast %13 : vector<1x128xf32> to vector<8x128xf32>
      %15 = arith.mulf %12, %14 : vector<8x128xf32>
      %c0_9 = arith.constant 0 : index
      %c0_10 = arith.constant 0 : index
      %16 = vector.load %arg4[%c0_9, %c0_10] : memref<1x128xf32, #tpu.memory_space<vmem>>, vector<1x128xf32>
      %17 = vector.broadcast %16 : vector<1x128xf32> to vector<8x128xf32>
      %18 = arith.addf %15, %17 : vector<8x128xf32>
      %cst = arith.constant 2.000000e+01 : f32
      %19 = vector.broadcast %cst : f32 to vector<8x128xf32>
      %20 = arith.cmpf ogt, %18, %19 : vector<8x128xf32>
      %cst_11 = arith.constant 2.000000e+01 : f32
      %21 = vector.broadcast %cst_11 : f32 to vector<8x128xf32>
      %22 = arith.minimumf %18, %21 : vector<8x128xf32>
      %23 = math.exp %22 : vector<8x128xf32>
      %24 = math.log1p %23 : vector<8x128xf32>
      %25 = arith.select %20, %18, %24 : vector<8x128xi1>, vector<8x128xf32>
      %26 = arith.truncf %25 : vector<8x128xf32> to vector<8x128xbf16>
      %c0_12 = arith.constant 0 : index
      %c0_13 = arith.constant 0 : index
      %27 = vector.load %arg5[%c0_12, %c0_13] : memref<128x64xbf16, #tpu.memory_space<vmem>>, vector<128x64xbf16>
      %cst_14 = arith.constant dense<0.000000e+00> : vector<8x64xf32>
      %28 = tpu.matmul %26, %27, %cst_14 {dimension_numbers = #tpu.dot_dimension_numbers<[1], [0], [0], [1], [0, 0, 1, 1], [], []>} : vector<8x128xbf16>, vector<128x64xbf16>, vector<8x64xf32> -> vector<8x64xf32>
      %c0_15 = arith.constant 0 : index
      %c0_16 = arith.constant 0 : index
      %29 = vector.load %arg6[%c0_15, %c0_16] : memref<1x64xf32, #tpu.memory_space<vmem>>, vector<1x64xf32>
      %30 = vector.broadcast %29 : vector<1x64xf32> to vector<8x64xf32>
      %31 = arith.addf %28, %30 : vector<8x64xf32>
      %cst_17 = arith.constant 2.000000e+01 : f32
      %32 = vector.broadcast %cst_17 : f32 to vector<8x64xf32>
      %33 = arith.cmpf ogt, %31, %32 : vector<8x64xf32>
      %cst_18 = arith.constant 2.000000e+01 : f32
      %34 = vector.broadcast %cst_18 : f32 to vector<8x64xf32>
      %35 = arith.minimumf %31, %34 : vector<8x64xf32>
      %36 = math.exp %35 : vector<8x64xf32>
      %37 = math.log1p %36 : vector<8x64xf32>
      %38 = arith.select %33, %31, %37 : vector<8x64xi1>, vector<8x64xf32>
      %39 = arith.truncf %38 : vector<8x64xf32> to vector<8x64xbf16>
      %c0_19 = arith.constant 0 : index
      %c0_20 = arith.constant 0 : index
      %40 = vector.load %arg7[%c0_19, %c0_20] : memref<64x8xbf16, #tpu.memory_space<vmem>>, vector<64x8xbf16>
      %cst_21 = arith.constant dense<0.000000e+00> : vector<8x8xf32>
      %41 = tpu.matmul %39, %40, %cst_21 {dimension_numbers = #tpu.dot_dimension_numbers<[1], [0], [0], [1], [0, 0, 1, 1], [], []>} : vector<8x64xbf16>, vector<64x8xbf16>, vector<8x8xf32> -> vector<8x8xf32>
      %c0_22 = arith.constant 0 : index
      %c0_23 = arith.constant 0 : index
      %42 = vector.load %arg8[%c0_22, %c0_23] : memref<1x8xf32, #tpu.memory_space<vmem>>, vector<1x8xf32>
      %43 = vector.broadcast %42 : vector<1x8xf32> to vector<8x8xf32>
      %44 = arith.addf %41, %43 : vector<8x8xf32>
      %45 = arith.truncf %44 : vector<8x8xf32> to vector<8x8xbf16>
      %c0_24 = arith.constant 0 : index
      %c0_25 = arith.constant 0 : index
      %46 = vector.load %arg9[%c0_24, %c0_25] : memref<8x64xbf16, #tpu.memory_space<vmem>>, vector<8x64xbf16>
      %cst_26 = arith.constant dense<0.000000e+00> : vector<8x64xf32>
      %47 = tpu.matmul %45, %46, %cst_26 {dimension_numbers = #tpu.dot_dimension_numbers<[1], [0], [0], [1], [0, 0, 1, 1], [], []>} : vector<8x8xbf16>, vector<8x64xbf16>, vector<8x64xf32> -> vector<8x64xf32>
      %c0_27 = arith.constant 0 : index
      %c0_28 = arith.constant 0 : index
      %48 = vector.load %arg10[%c0_27, %c0_28] : memref<1x64xf32, #tpu.memory_space<vmem>>, vector<1x64xf32>
      %49 = vector.broadcast %48 : vector<1x64xf32> to vector<8x64xf32>
      %50 = arith.addf %47, %49 : vector<8x64xf32>
      %cst_29 = arith.constant 2.000000e+01 : f32
      %51 = vector.broadcast %cst_29 : f32 to vector<8x64xf32>
      %52 = arith.cmpf ogt, %50, %51 : vector<8x64xf32>
      %cst_30 = arith.constant 2.000000e+01 : f32
      %53 = vector.broadcast %cst_30 : f32 to vector<8x64xf32>
      %54 = arith.minimumf %50, %53 : vector<8x64xf32>
      %55 = math.exp %54 : vector<8x64xf32>
      %56 = math.log1p %55 : vector<8x64xf32>
      %57 = arith.select %52, %50, %56 : vector<8x64xi1>, vector<8x64xf32>
      %58 = arith.truncf %57 : vector<8x64xf32> to vector<8x64xbf16>
      %c0_31 = arith.constant 0 : index
      %c0_32 = arith.constant 0 : index
      %59 = vector.load %arg11[%c0_31, %c0_32] : memref<64x128xbf16, #tpu.memory_space<vmem>>, vector<64x128xbf16>
      %cst_33 = arith.constant dense<0.000000e+00> : vector<8x128xf32>
      %60 = tpu.matmul %58, %59, %cst_33 {dimension_numbers = #tpu.dot_dimension_numbers<[1], [0], [0], [1], [0, 0, 1, 1], [], []>} : vector<8x64xbf16>, vector<64x128xbf16>, vector<8x128xf32> -> vector<8x128xf32>
      %c0_34 = arith.constant 0 : index
      %c0_35 = arith.constant 0 : index
      %61 = vector.load %arg12[%c0_34, %c0_35] : memref<1x128xf32, #tpu.memory_space<vmem>>, vector<1x128xf32>
      %62 = vector.broadcast %61 : vector<1x128xf32> to vector<8x128xf32>
      %63 = arith.addf %60, %62 : vector<8x128xf32>
      %cst_36 = arith.constant 2.000000e+01 : f32
      %64 = vector.broadcast %cst_36 : f32 to vector<8x128xf32>
      %65 = arith.cmpf ogt, %63, %64 : vector<8x128xf32>
      %cst_37 = arith.constant 2.000000e+01 : f32
      %66 = vector.broadcast %cst_37 : f32 to vector<8x128xf32>
      %67 = arith.minimumf %63, %66 : vector<8x128xf32>
      %68 = math.exp %67 : vector<8x128xf32>
      %69 = math.log1p %68 : vector<8x128xf32>
      %70 = arith.select %65, %63, %69 : vector<8x128xi1>, vector<8x128xf32>
      %c0_38 = arith.constant 0 : index
      %c0_39 = arith.constant 0 : index
      %71 = vector.load %arg18[%c0_38, %c0_39] : memref<8x128xf32, #tpu.memory_space<vmem>>, vector<8x128xf32>
      tpu.vector_store %arg18[%c0_38, %c0_39], %70 {strides = array<i32>} : memref<8x128xf32, #tpu.memory_space<vmem>>, vector<8x128xf32>,
    } else {
    }
    %c1_i32_4 = arith.constant 1 : i32
    %9 = arith.cmpi sge, %arg0, %c1_i32_4 : i32
    %10 = arith.extui %9 : i1 to i32
    %c0_i32_5 = arith.constant 0 : i32
    %11 = arith.cmpi ne, %10, %c0_i32_5 : i32
    scf.if %11 {
      %c0 = arith.constant 0 : index
      %c0_6 = arith.constant 0 : index
      %12 = vector.load %arg13[%c0, %c0_6] : memref<2048x128xbf16, #tpu.memory_space<vmem>>, vector<2048x128xbf16>
      %c0_7 = arith.constant 0 : index
      %c0_8 = arith.constant 0 : index
      %13 = vector.load %arg18[%c0_7, %c0_8] : memref<8x128xf32, #tpu.memory_space<vmem>>, vector<8x128xf32>
      %14 = arith.truncf %13 : vector<8x128xf32> to vector<8x128xbf16>
      %cst = arith.constant dense<0.000000e+00> : vector<8x2048xf32>
      %15 = tpu.matmul %14, %12, %cst {dimension_numbers = #tpu.dot_dimension_numbers<[1], [1], [0], [0], [0, 0, 1, 0], [], []>} : vector<8x128xbf16>, vector<2048x128xbf16>, vector<8x2048xf32> -> vector<8x2048xf32>
      %c0_9 = arith.constant 0 : index
      %c0_10 = arith.constant 0 : index
      %16 = vector.load %arg14[%c0_9, %c0_10] : memref<1x2048xf32, #tpu.memory_space<vmem>>, vector<1x2048xf32>
      %17 = vector.broadcast %16 : vector<1x2048xf32> to vector<8x2048xf32>
      %18 = arith.mulf %15, %17 : vector<8x2048xf32>
      %c0_11 = arith.constant 0 : index
      %c0_12 = arith.constant 0 : index
      %19 = vector.load %arg15[%c0_11, %c0_12] : memref<1x2048xf32, #tpu.memory_space<vmem>>, vector<1x2048xf32>
      %20 = vector.broadcast %19 : vector<1x2048xf32> to vector<8x2048xf32>
      %21 = arith.addf %18, %20 : vector<8x2048xf32>
      %c0_13 = arith.constant 0 : index
      %c0_14 = arith.constant 0 : index
      %22 = vector.load %arg16[%c0_13, %c0_14] : memref<8x2048xf32, #tpu.memory_space<vmem>>, vector<8x2048xf32>
      tpu.vector_store %arg16[%c0_13, %c0_14], %21 {strides = array<i32>} : memref<8x2048xf32, #tpu.memory_space<vmem>>, vector<8x2048xf32>,
    } else {
    }
    return
  }
  func.func @transform_0(%arg0: i32) -> (i32, i32) {
    %c0_i32 = arith.constant 0 : i32
    %c0_i32_0 = arith.constant 0 : i32
    %c0_i32_1 = arith.constant 0 : i32
    return %c0_i32, %c0_i32_0 : i32, i32
  }
  func.func @transform_1(%arg0: i32) -> (i32, i32) {
    %c0_i32 = arith.constant 0 : i32
    %0 = arith.minsi %arg0, %c0_i32 : i32
    %c0_i32_0 = arith.constant 0 : i32
    %c0_i32_1 = arith.constant 0 : i32
    return %0, %c0_i32_0 : i32, i32
  }
  func.func @transform_2(%arg0: i32) -> (i32, i32) {
    %c0_i32 = arith.constant 0 : i32
    %c0_i32_0 = arith.constant 0 : i32
    %c0_i32_1 = arith.constant 0 : i32
    return %c0_i32, %c0_i32_0 : i32, i32
  }
  func.func @transform_3(%arg0: i32) -> (i32, i32) {
    %c0_i32 = arith.constant 0 : i32
    %c0_i32_0 = arith.constant 0 : i32
    %c0_i32_1 = arith.constant 0 : i32
    return %c0_i32, %c0_i32_0 : i32, i32
  }
  func.func @transform_4(%arg0: i32) -> (i32, i32) {
    %c0_i32 = arith.constant 0 : i32
    %c0_i32_0 = arith.constant 0 : i32
    %c0_i32_1 = arith.constant 0 : i32
    return %c0_i32, %c0_i32_0 : i32, i32
  }
  func.func @transform_5(%arg0: i32) -> (i32, i32) {
    %c0_i32 = arith.constant 0 : i32
    %c0_i32_0 = arith.constant 0 : i32
    %c0_i32_1 = arith.constant 0 : i32
    return %c0_i32, %c0_i32_0 : i32, i32
  }
  func.func @transform_6(%arg0: i32) -> (i32, i32) {
    %c0_i32 = arith.constant 0 : i32
    %c0_i32_0 = arith.constant 0 : i32
    %c0_i32_1 = arith.constant 0 : i32
    return %c0_i32, %c0_i32_0 : i32, i32
  }
  func.func @transform_7(%arg0: i32) -> (i32, i32) {
    %c0_i32 = arith.constant 0 : i32
    %c0_i32_0 = arith.constant 0 : i32
    %c0_i32_1 = arith.constant 0 : i32
    return %c0_i32, %c0_i32_0 : i32, i32
  }
  func.func @transform_8(%arg0: i32) -> (i32, i32) {
    %c0_i32 = arith.constant 0 : i32
    %c0_i32_0 = arith.constant 0 : i32
    %c0_i32_1 = arith.constant 0 : i32
    return %c0_i32, %c0_i32_0 : i32, i32
  }
  func.func @transform_9(%arg0: i32) -> (i32, i32) {
    %c0_i32 = arith.constant 0 : i32
    %c0_i32_0 = arith.constant 0 : i32
    %c0_i32_1 = arith.constant 0 : i32
    return %c0_i32, %c0_i32_0 : i32, i32
  }
  func.func @transform_10(%arg0: i32) -> (i32, i32) {
    %c0_i32 = arith.constant 0 : i32
    %c0_i32_0 = arith.constant 0 : i32
    %c0_i32_1 = arith.constant 0 : i32
    return %c0_i32, %c0_i32_0 : i32, i32
  }
  func.func @transform_11(%arg0: i32) -> (i32, i32) {
    %c0_i32 = arith.constant 0 : i32
    %c0_i32_0 = arith.constant 0 : i32
    %c0_i32_1 = arith.constant 0 : i32
    return %c0_i32, %c0_i32_0 : i32, i32
  }
  func.func @transform_12(%arg0: i32) -> (i32, i32) {
    %c1_i32 = arith.constant 1 : i32
    %0 = arith.subi %arg0, %c1_i32 : i32
    %c0_i32 = arith.constant 0 : i32
    %1 = arith.maxsi %0, %c0_i32 : i32
    %c0_i32_0 = arith.constant 0 : i32
    %c0_i32_1 = arith.constant 0 : i32
    return %1, %c0_i32_0 : i32, i32
  }
  func.func @transform_13(%arg0: i32) -> (i32, i32) {
    %c1_i32 = arith.constant 1 : i32
    %0 = arith.subi %arg0, %c1_i32 : i32
    %c0_i32 = arith.constant 0 : i32
    %1 = arith.maxsi %0, %c0_i32 : i32
    %c0_i32_0 = arith.constant 0 : i32
    %c0_i32_1 = arith.constant 0 : i32
    return %c0_i32_0, %1 : i32, i32
  }
  func.func @transform_14(%arg0: i32) -> (i32, i32) {
    %c1_i32 = arith.constant 1 : i32
    %0 = arith.subi %arg0, %c1_i32 : i32
    %c0_i32 = arith.constant 0 : i32
    %1 = arith.maxsi %0, %c0_i32 : i32
    %c0_i32_0 = arith.constant 0 : i32
    %c0_i32_1 = arith.constant 0 : i32
    return %c0_i32_0, %1 : i32, i32
  }
  func.func @transform_15(%arg0: i32) -> (i32, i32) {
    %c1_i32 = arith.constant 1 : i32
    %0 = arith.subi %arg0, %c1_i32 : i32
    %c0_i32 = arith.constant 0 : i32
    %1 = arith.maxsi %0, %c0_i32 : i32
    %c0_i32_0 = arith.constant 0 : i32
    %c0_i32_1 = arith.constant 0 : i32
    return %c0_i32_0, %1 : i32, i32
  }
}

</mosaic_0001>

<bundles_post_ra>
// kernel: tpu_custom_call.1
= control target key start
LH: loop header
LB: loop body
LE: loop exit
PB: predicated region body
PF: predicated region fallthrough
CT: control target
= control target key end

     0   :  { %s6762_s0 = inlined_call_operand.vmem [shape: f32[8,2048], index: 0, kind: input, shape index: {}]   ;;  %s6763_s1 = inlined_call_operand.hbm [shape: bf16[2048,128], index: 1, kind: input, shape index: {}]   ;;  %s6764_s2 = inlined_call_operand.hbm [shape: f32[1,128], index: 2, kind: input, shape index: {}]   ;;  %s6765_s3 = inlined_call_operand.hbm [shape: f32[1,128], index: 3, kind: input, shape index: {}]   ;;  %s6766_s4 = inlined_call_operand.vmem [shape: bf16[128,64], index: 4, kind: input, shape index: {}]   ;;  %s6767_s5 = inlined_call_operand.hbm [shape: f32[1,64], index: 5, kind: input, shape index: {}]   ;;  %s6768_s6 = inlined_call_operand.vmem [shape: bf16[64,8], index: 6, kind: input, shape index: {}]   ;;  %s6769_s7 = inlined_call_operand.hbm [shape: f32[1,8], index: 7, kind: input, shape index: {}]   ;;  %s6770_s8 = inlined_call_operand.hbm [shape: bf16[8,64], index: 8, kind: input, shape index: {}]   ;;  %s6771_s9 = inlined_call_operand.vmem [shape: f32[1,64], index: 9, kind: input, shape index: {}]   ;;  %s6772_s10 = inlined_call_operand.hbm [shape: bf16[64,128], index: 10, kind: input, shape index: {}]   ;;  %s6773_s11 = inlined_call_operand.vmem [shape: f32[1,128], index: 11, kind: input, shape index: {}]   ;;  %s6774_s12 = inlined_call_operand.hbm [shape: bf16[2048,128], index: 12, kind: input, shape index: {}]   ;;  %s6775_s13 = inlined_call_operand.vmem [shape: f32[1,2048], index: 13, kind: input, shape index: {}]   ;;  %s6776_s14 = inlined_call_operand.hbm [shape: f32[1,2048], index: 14, kind: input, shape index: {}]   ;;  %s6777_s15 = inlined_call_operand.hbm [shape: f32[8,2048], index: 15, kind: output, shape index: {}]  }
   0x1   :  { %6801 = sst [smem:[#allocation31_spill]] %s6762_s0 }
   0x2   :  { %6802 = sst [smem:[#allocation32_spill]] %s6763_s1 }
   0x3   :  { %6803 = sst [smem:[#allocation33_spill]] %s6764_s2 }
   0x4   :  { %6804 = sst [smem:[#allocation34_spill]] %s6765_s3 }
   0x5   :  { %6805 = sst [smem:[#allocation35_spill]] %s6766_s4 }
   0x6   :  { %6806 = sst [smem:[#allocation36_spill]] %s6767_s5 }
   0x7   :  { %6807 = sst [smem:[#allocation37_spill]] %s6768_s6 }
   0x8   :  { %6808 = sst [smem:[#allocation38_spill]] %s6769_s7 }
   0x9   :  { %6809 = sst [smem:[#allocation39_spill]] %s6770_s8 }
   0xa   :  { %6810 = sst [smem:[#allocation40_spill]] %s6771_s9 }
   0xb   :  { %6811 = sst [smem:[#allocation41_spill]] %s6772_s10 }
   0xc   :  { %6812 = sst [smem:[#allocation42_spill]] %s6773_s11 }
   0xd   :  { %6813 = sst [smem:[#allocation43_spill]] %s6774_s12 }
   0xe   :  { %6814 = sst [smem:[#allocation44_spill]] %s6775_s13 }
   0xf   :  { %6815 = sst [smem:[#allocation45_spill]] %s6777_s15 }
  0x10   :  { %20 = vsyncpa [#allocation5], 0 }
  0x11   :  { %22 = vsyncpa [#allocation5 + $0x1], 0 }
  0x12   :  { %23 = vsyncpa [#allocation8], 0 }
  0x13   :  { %24 = vsyncpa [#allocation11], 0 }
  0x14   :  { %25 = vsyncpa [#allocation14], 0 }
  0x15   :  { %26 = vsyncpa [#allocation17], 0 }
  0x16   :  { %28 = vsyncpa [#allocation17 + $0x1], 0 }
  0x17   :  { %29 = vsyncpa [#allocation6], 0 }
  0x18   :  { %31 = vsyncpa [#allocation6 + $0x1], 0  ;;  %s5934_s18 = smov 0   ;;  %s5936_s19 = smov 0  }
  0x19   :  { %s5938_s20 = smov 0   ;;  %s5940_s21 = smov 0  }
  0x1a   :  { %s5942_s22 = smov 0   ;;  %s5944_s23 = smov 0  }
  0x1b   :  { %s5946_s24 = smov 0  }
  0x1c LB: > { %6816 = sst [smem:[#allocation26_spill]] %s5813_s18  ;;  %s5839_s25 = smov [#allocation7]   ;;  %s5837_s24 = sphi %s5946_s24, %s6883_s24   ;;  %s5833_s23 = sphi %s5944_s23, %s6877_s23   ;;  %s5829_s22 = sphi %s5942_s22, %s6882_s22   ;;  %s5825_s21 = sphi %s5940_s21, %s6881_s21   ;;  %s5821_s20 = sphi %s5938_s20, %s6880_s20   ;;  %s5817_s19 = sphi %s5936_s19, %s6879_s19   ;;  %s5813_s18 = sphi %s5934_s18, %s6878_s18  }
  0x1d   : > { %6817 = sst [smem:[#allocation27_spill]] %s5833_s23  ;;  %s447_s26 = sshll.u32 %s5839_s25, 4  ;;  %s448_s26 = int_to_ptr.vmem [resolvable:$true] %s447_s26 }
  0x1e   : > { %s5970_s27 = sadd.s32 4294967295, %s5837_s24   ;;  %p4339_p0 = scmp.ge.s32.totalorder %s5837_s24, 1 }
  0x1f   : > { %p6781_p1 = scmp.eq.s32.totalorder %s5970_s27, 0  ;;  %p431_p2 = scmp.lt.s32.totalorder %s5837_s24, 3 }
  0x20   : > { %s5840_s29 = smov [#allocation10]   ;;  %s5841_s16 = smov [#allocation13]  }
  0x21   : > { %p5976_p4 = pnand %p4339_p0, %p431_p2  ;;  %s472_s30 = sshll.u32 %s5840_s29, 4  ;;  %s473_s30 = int_to_ptr.vmem [resolvable:$true] %s472_s30 }
  0x22   : > { %s497_s17 = sshll.u32 %s5841_s16, 4  ;;  %s5504_s11 = scalar_lea.vmem %s448_s26, 16  ;;  %s5989_s17 = int_to_ptr.vmem [resolvable:$true] %s497_s17 }
  0x23   : > { %s6818_s28 = scalar_select %p5976_p4, 1, 0 }
  0x24   : > { %p5091_p6 = pneg %p5976_p4  ;;  %p5505_p9 = scmp.ne.s32.totalorder %s448_s26, %s5504_s11 }
  0x25   : > { %s5511_s29 = scalar_lea.vmem %s448_s26, 32  ;;  %p5512_p12 = scmp.lt.s32.totalorder %s448_s26, %s448_s26 }
  0x26   : > { %p5985_p7 = pnand %p5091_p6, %p6781_p1  ;;  %p5513_p13 = scmp.lt.s32.totalorder %s5511_s29, %s5504_s11 }
  0x28   : > { %s6819_s25 = scalar_select %p5985_p7, 1, 0 }
  0x29   : > { %p5993_p8 = pneg %p5985_p7  ;;  %p5514_p0 = por %p5513_p13, %p5512_p12 }
  0x2b   : > { %p5507_p10 = pnand %p5505_p9, %p5993_p8 }
  0x2d   : > { %p5508_p11 = pneg %p5507_p10 }
  0x2f   : > { %p5515_p2 = pnand %p5514_p0, %p5508_p11 }
  0x31   : > { %5518 = shalt.err (!%p5515_p2)
}
  0x32   : > { %s6821_s2 = sld [smem:[#allocation33_spill]]  ;;  %s5530_s6 = scalar_lea.vmem %s473_s30, 16 }
  0x33   : > { %p5531_p6 = scmp.ne.s32.totalorder %s473_s30, %s5530_s6  ;;  %s5537_s4 = scalar_lea.vmem %s473_s30, 32 }
  0x34   : > { %p5538_p9 = scmp.lt.s32.totalorder %s473_s30, %s473_s30  ;;  %p5539_p10 = scmp.lt.s32.totalorder %s5537_s4, %s5530_s6 }
  0x35   : > { %p5533_p5 = pnand %p5531_p6, %p5993_p8 }
  0x36   : > { %p5540_p1 = por %p5539_p10, %p5538_p9 }
  0x37   : > { %p5534_p3 = pneg %p5533_p5 }
  0x38   : > { %5094 = dma.hbm_to_vmem [thread:$0]  (!%p5985_p7), %s6821_s2, 16, %s448_s26, [#allocation8]  }
  0x39   : > { %p5541_p4 = pnand %p5540_p1, %p5534_p3 }
  0x3b   : > { %5544 = shalt.err (!%p5541_p4)
}
  0x3c   : > { %s6822_s5 = sld [smem:[#allocation36_spill]]  ;;  %s5556_s9 = scalar_lea.vmem %s5989_s17, 64 }
  0x3d   : > { %p5557_p11 = scmp.ne.s32.totalorder %s5989_s17, %s5556_s9  ;;  %p5564_p13 = scmp.lt.s32.totalorder %s5989_s17, %s5989_s17 }
  0x3e   : > { %p5565_p0 = scmp.lt.s32.totalorder %s5556_s9, %s5556_s9 }
  0x3f   : > { %p5559_p5 = pnand %p5557_p11, %p5993_p8 }
  0x40   : > { %p5566_p1 = por %p5565_p0, %p5564_p13 }
  0x41   : > { %p5560_p12 = pneg %p5559_p5 }
  0x42   : > { %5100 = dma.hbm_to_vmem [thread:$0]  (!%p5985_p7), %s6822_s5, 16, %s473_s30, [#allocation11]  }
  0x43   : > { %p5567_p3 = pnand %p5566_p1, %p5560_p12 }
  0x45   : > { %5570 = shalt.err (!%p5567_p3)
}
  0x46   : > { %s6823_s8 = sld [smem:[#allocation39_spill]]  ;;  %s4330_s26 = sadd.s32 4294967294, %s5837_s24  }
  0x47   : > { %p6789_p4 = scmp.eq.s32.totalorder %s5837_s24, 0  ;;  %p303_p2 = scmp.gt.s32.totalorder %s5970_s27, 0 }
  0x48   : > { %p318_p6 = scmp.ne.s32.totalorder %s5821_s20, %s5817_s19  ;;  %p324_p10 = scmp.ne.s32.totalorder %s5817_s19, %s5813_s18 }
  0x49   : > { %s6030_s16 = scalar_select %p303_p2, %s5970_s27, 0 }
  0x4a   : > { %p6034_p9 = por %p318_p6, %p6789_p4  ;;  %p418_p11 = scmp.eq.s32.totalorder %s5970_s27, 1 }
  0x4b   : > { %p424_p5 = scmp.eq.s32.totalorder %s4330_s26, 1  ;;  %p6825_p12 = scmp.eq.s32.totalorder %s5970_s27, 0 }
  0x4c   : > { %5106 = dma.hbm_to_vmem [thread:$0]  (!%p5985_p7), %s6823_s8, 64, %s5989_s17, [#allocation14]  }
  0x4d   : > { %p6043_p13 = por %p324_p10, %p6825_p12  ;;  %p6047_p0 = por %p418_p11, %p318_p6 }
  0x4e   : > { %p6051_p1 = por %p424_p5, %p324_p10  ;;  %p6788_p3 = scmp.lt.s32.totalorder %s5837_s24, 2 }
  0x4f   : > { %s6826_s17 = scalar_select %p6043_p13, 1, 0 }
  0x50   : > { %s6827_s29 = scalar_select %p6047_p0, 1, 0 }
  0x51   : > { %s6829_s9 = scalar_select %p6051_p1, 1, 0 }
  0x52   : > { %6828 = sst [smem:[#allocation28_spill]] %s6827_s29  ;;  %s550_s4 = sand.u32 1, %s5837_s24  }
  0x53   : > { %6830 = sst [smem:[#allocation29_spill]] %s6829_s9  ;;  %s6787_s6 = sand.u32 1, %s5821_s20  }
  0x54   : > { %s4350_s30 = sshll.u32 %s6787_s6, 10  ;;  %s4665_s2 = sshll.u32 %s6030_s16, 14 }
  0x55   : > { %s6831_s12 = sld [smem:[#allocation43_spill]]  ;;  %s554_s18 = scalar_lea.vmem [#allocation16], %s4350_s30 }
  0x56   : > { %s564_s29 = sshll.u32 %s554_s18, 4  ;;  %p6072_p2 = pnand %p6788_p3, %p6034_p9  ;;  %s6066_s29 = int_to_ptr.vmem [resolvable:$true] %s564_s29 }
  0x57   : > { %s5842_s6 = smov [#allocation9]  }
  0x58   : > { %s6832_s9 = scalar_select %p6072_p2, 1, 0 }
  0x59   : > { %s6076_s0 = sshll.u32 %s5842_s6, 4  ;;  %p6794_p10 = pneg %p6072_p2  ;;  %s459_s0 = int_to_ptr.vmem [resolvable:$true] %s6076_s0 }
  0x5b   : > { %s6064_s8 = scalar_lea.hbm %s6831_s12, %s4665_s2  ;;  %s6078_s2 = scalar_lea.sflag [#allocation17], %s550_s4 }
  0x5c   : > { %s5571_s5 = scalar_lea.hbm %s6064_s8, 16384  ;;  %s5576_s11 = scalar_lea.hbm %s6831_s12, 16384 }
  0x5d   : > { %p5572_p6 = scmp.ne.s32.totalorder %s6064_s8, %s5571_s5  ;;  %p5577_p9 = scmp.lt.s32.totalorder %s6064_s8, %s6831_s12 }
  0x5e   : > { %p5578_p12 = scmp.lt.s32.totalorder %s5576_s11, %s5571_s5 }
  0x5f   : > { %p5574_p11 = pnand %p6794_p10, %p5572_p6 }
  0x60   : > { %p5579_p3 = por %p5578_p12, %p5577_p9 }
  0x61   : > { %p5575_p5 = pneg %p5574_p11 }
  0x63   : > { %p5580_p4 = pnand %p5579_p3, %p5575_p5 }
  0x65   : > { %5583 = shalt.err (!%p5580_p4)
}
  0x66   : > { %s5584_s4 = scalar_lea.vmem %s6066_s29, 16384  ;;  %s5843_s6 = smov [#allocation16]  }
  0x67   : > { %p5585_p1 = scmp.ne.s32.totalorder %s6066_s29, %s5584_s4  ;;  %s5589_s18 = sshll.u32 %s5843_s6, 4  ;;  %s5590_s18 = int_to_ptr.vmem [resolvable:$false] %s5589_s18 }
  0x68   : > { %s5591_s30 = scalar_lea.vmem %s5590_s18, 32768  ;;  %p5592_p0 = scmp.lt.s32.totalorder %s6066_s29, %s5590_s18 }
  0x69   : > { %p5587_p6 = pnand %p5585_p1, %p6794_p10  ;;  %p5593_p13 = scmp.lt.s32.totalorder %s5591_s30, %s5584_s4 }
  0x6b   : > { %p5588_p11 = pneg %p5587_p6  ;;  %p5594_p7 = por %p5593_p13, %p5592_p0 }
  0x6d   : > { %p5595_p9 = pnand %p5594_p7, %p5588_p11 }
  0x6f   : > { %5598 = shalt.err (!%p5595_p9)
}
  0x70   : > { %s6795_s13 = smov 64   ;;  %s6796_s5 = smov 4  }
  0x71   : > { %5116 = dma.hbm_to_vmem [thread:$0]  (!%p6072_p2), %s6064_s8, 16384, %s6066_s29, %s6078_s2, %s6795_s13, %s6795_s13, %s6796_s5  }
  0x72   : > { %s5846_s11 = smov [#allocation12]   ;;  %s5610_s4 = scalar_lea.vmem %s459_s0, 16 }
  0x73   : > { %s486_s26 = sshll.u32 %s5846_s11, 4  ;;  %p5611_p4 = scmp.ne.s32.totalorder %s459_s0, %s5610_s4  ;;  %s487_s26 = int_to_ptr.vmem [resolvable:$true] %s486_s26 }
  0x74   : > { %s5617_s6 = scalar_lea.vmem %s459_s0, 32  ;;  %p5618_p0 = scmp.lt.s32.totalorder %s459_s0, %s459_s0 }
  0x75   : > { %p5613_p7 = pnand %p5611_p4, %p5993_p8  ;;  %p5619_p1 = scmp.lt.s32.totalorder %s5617_s6, %s5610_s4 }
  0x77   : > { %p5614_p13 = pneg %p5613_p7  ;;  %p5620_p3 = por %p5619_p1, %p5618_p0 }
  0x79   : > { %p5621_p5 = pnand %p5620_p3, %p5614_p13 }
  0x7b   : > { %5624 = shalt.err (!%p5621_p5)
}
  0x7c   : > { %p6833_p12 = scmp.ne.s32.totalorder %s6819_s25, 0  ;;  %s6834_s3 = sld [smem:[#allocation34_spill]] }
  0x7d   : > { %s5636_s8 = scalar_lea.vmem %s487_s26, 16  ;;  %s5643_s29 = scalar_lea.vmem %s487_s26, 32 }
  0x7e   : > { %p5637_p6 = scmp.ne.s32.totalorder %s487_s26, %s5636_s8  ;;  %p5644_p4 = scmp.lt.s32.totalorder %s487_s26, %s487_s26 }
  0x7f   : > { %p5645_p7 = scmp.lt.s32.totalorder %s5643_s29, %s5636_s8 }
  0x80   : > { %p5639_p11 = pnand %p5637_p6, %p5993_p8 }
  0x81   : > { %p5646_p10 = por %p5645_p7, %p5644_p4 }
  0x82   : > { %5097 = dma.hbm_to_vmem [thread:$0]  (!%p6833_p12), %s6834_s3, 16, %s459_s0, [#allocation8]  }
  0x83   : > { %p5640_p9 = pneg %p5639_p11 }
  0x85   : > { %p5647_p0 = pnand %p5646_p10, %p5640_p9 }
  0x87   : > { %5650 = shalt.err (!%p5647_p0)
}
  0x88   : > { %s6835_s7 = sld [smem:[#allocation38_spill]]  ;;  %s5847_s0 = smov [#allocation15]  }
  0x89   : > { %s510_s6 = sshll.u32 %s5847_s0, 4  ;;  %s511_s6 = int_to_ptr.vmem [resolvable:$true] %s510_s6 }
  0x8a   : > { %s5662_s18 = scalar_lea.vmem %s511_s6, 512  ;;  %p5670_p5 = scmp.lt.s32.totalorder %s511_s6, %s511_s6 }
  0x8b   : > { %p5663_p13 = scmp.ne.s32.totalorder %s511_s6, %s5662_s18  ;;  %p5671_p6 = scmp.lt.s32.totalorder %s5662_s18, %s5662_s18 }
  0x8d   : > { %p5665_p1 = pnand %p5663_p13, %p5993_p8  ;;  %p5672_p11 = por %p5671_p6, %p5670_p5 }
  0x8e   : > { %5103 = dma.hbm_to_vmem [thread:$0]  (!%p6833_p12), %s6835_s7, 16, %s487_s26, [#allocation11]  }
  0x8f   : > { %p5666_p3 = pneg %p5665_p1 }
  0x91   : > { %p5673_p10 = pnand %p5672_p11, %p5666_p3 }
  0x93   : > { %5676 = shalt.err (!%p5673_p10)
}
  0x94   : > { %s6836_s10 = sld [smem:[#allocation41_spill]]  ;;  %s6134_s15 = sadd.s32 1, %s5837_s24  }
  0x95   : > { %p62_p8 = scmp.lt.s32.totalorder %s5837_s24, 0  ;;  %p64_p9 = scmp.lt.s32.totalorder %s6134_s15, 0 }
  0x96   : > { %s69_s25 = sadd.s32 1, %s5833_s23  ;;  %p76_p4 = scmp.ne.s32.totalorder %s5833_s23, %s5829_s22 }
  0x97   : > { %s63_s8 = scalar_select %p62_p8, %s5837_s24, 0 }
  0x98   : > { %s65_s29 = scalar_select %p64_p9, %s6134_s15, 0 }
  0x99   : > { %p82_p7 = scmp.ne.s32.totalorder %s5829_s22, %s5825_s21  ;;  %s4332_s4 = sadd.s32 4294967295, %s6134_s15 }
  0x9a   : > { %5109 = dma.hbm_to_vmem [thread:$0]  (!%p6833_p12), %s6836_s10, 512, %s511_s6, [#allocation14], %s6795_s13, %s6795_s13, %s6796_s5  }
  0x9b   : > { %s66_s11 = ssub.s32 %s63_s8, %s65_s29  ;;  %p6837_p0 = scmp.eq.s32.totalorder %s5837_s24, 0 }
  0x9c   : > { %p67_p12 = scmp.eq.s32.totalorder %s66_s11, 0  ;;  %p6839_p1 = scmp.eq.s32.totalorder %s5970_s27, 0 }
  0x9d   : > { %p6148_p13 = por %p6837_p0, %p76_p4  ;;  %p306_p5 = scmp.gt.s32.totalorder %s4332_s4, 0 }
  0x9e   : > { %p6154_p3 = por %p6839_p1, %p82_p7  ;;  %s527_s21 = sand.u32 1, %s5833_s23  }
  0x9f   : > { %s6159_s18 = scalar_select %p67_p12, %s5833_s23, %s69_s25  }
  0xa0   : > { %s6840_s6 = scalar_select %p6154_p3, 1, 0 }
  0xa1   : > { %6841 = sst [smem:[#allocation30_spill]] %s6159_s18  ;;  %s6885_s4 = smov (!%p306_p5, %s4332_s4), 0 }
  0xa2   : > { %s4664_s30 = sshll.u32 %s63_s8, 14  ;;  %s308_s26 = ssub.s32 %s6030_s16, %s6885_s4 }
  0xa3   : > { %p309_p6 = scmp.eq.s32.totalorder %s308_s26, 0  ;;  %s4347_s29 = sshll.u32 %s527_s21, 10 }
  0xa4   : > { %s6842_s1 = sld [smem:[#allocation32_spill]]  ;;  %s6843_s3 = sadd.s32 1, %s5821_s20 }
  0xa5   : > { %s6171_s7 = scalar_select %p309_p6, %s5821_s20, %s6843_s3  }
  0xa6   : > { %s531_s10 = scalar_lea.vmem [#allocation4], %s4347_s29  ;;  %p6844_p11 = scmp.lt.s32.totalorder %s5837_s24, 2 }
  0xa7   : > { %s540_s25 = sshll.u32 %s531_s10, 4  ;;  %s6846_s13 = sand.u32 1, %s5821_s20   ;;  %s6181_s25 = int_to_ptr.vmem [resolvable:$true] %s540_s25 }
  0xa8   : > { %p6177_p10 = pnand %p6844_p11, %p6148_p13  ;;  %s6185_s4 = sshll.u32 %s6846_s13, 4 }
  0xaa   : > { %s6166_s5 = scalar_lea.hbm %s6842_s1, %s4664_s30  ;;  %s6187_s30 = scalar_lea.sflag [#allocation5], %s527_s21 }
  0xab   : > { %s5677_s26 = scalar_lea.hbm %s6166_s5, 16384  ;;  %p5679_p9 = pneg %p6177_p10 }
  0xac   : > { %p5678_p8 = scmp.ne.s32.totalorder %s6166_s5, %s5677_s26  ;;  %s5682_s0 = scalar_lea.hbm %s6842_s1, 16384 }
  0xad   : > { %p5683_p12 = scmp.lt.s32.totalorder %s6166_s5, %s6842_s1  ;;  %p5684_p0 = scmp.lt.s32.totalorder %s5682_s0, %s5677_s26 }
  0xae   : > { %p5680_p4 = pnand %p5679_p9, %p5678_p8 }
  0xaf   : > { %p5685_p13 = por %p5684_p0, %p5683_p12 }
  0xb0   : > { %p5681_p7 = pneg %p5680_p4 }
  0xb2   : > { %p5686_p1 = pnand %p5685_p13, %p5681_p7 }
  0xb4   : > { %5689 = shalt.err (!%p5686_p1)
}
  0xb5   : > { %s5690_s21 = scalar_lea.vmem %s6181_s25, 16384  ;;  %s5848_s13 = smov [#allocation4]  }
  0xb6   : > { %p5691_p5 = scmp.ne.s32.totalorder %s6181_s25, %s5690_s21  ;;  %s5695_s12 = sshll.u32 %s5848_s13, 4  ;;  %s5696_s12 = int_to_ptr.vmem [resolvable:$false] %s5695_s12 }
  0xb7   : > { %s5697_s3 = scalar_lea.vmem %s5696_s12, 32768  ;;  %p5698_p8 = scmp.lt.s32.totalorder %s6181_s25, %s5696_s12 }
  0xb8   : > { %p5693_p6 = pnand %p5691_p5, %p5679_p9  ;;  %p5699_p4 = scmp.lt.s32.totalorder %s5697_s3, %s5690_s21 }
  0xba   : > { %p5694_p11 = pneg %p5693_p6  ;;  %p5700_p3 = por %p5699_p4, %p5698_p8 }
  0xbc   : > { %p5701_p2 = pnand %p5700_p3, %p5694_p11 }
  0xbe   : > { %5704 = shalt.err (!%p5701_p2)
}
  0xbf   : > { %s6847_s26 = smov 4   ;;  %s6848_s10 = smov 64  }
  0xc0   : > { %5113 = dma.hbm_to_vmem [thread:$0]  (!%p6177_p10), %s6166_s5, 16384, %s6181_s25, %s6187_s30, %s6848_s10, %s6848_s10, %s6847_s26  }
  0xc1   : > { %s4666_s0 = sshll.u32 %s6030_s16, 8  ;;  %s592_s29 = scalar_lea.vmem [#allocation18], %s6185_s4 }
  0xc2   : > { %s603_s11 = sshll.u32 %s592_s29, 4  ;;  %s601_s13 = scalar_lea.hbm %s6776_s14, %s4666_s0  ;;  %s604_s11 = int_to_ptr.vmem [resolvable:$true] %s603_s11 }
  0xc3   : > { %s5705_s3 = scalar_lea.hbm %s601_s13, 256  ;;  %p6849_p3 = scmp.ne.s32.totalorder %s6832_s9, 0 }
  0xc4   : > { %p5706_p2 = scmp.ne.s32.totalorder %s601_s13, %s5705_s3  ;;  %s5710_s18 = scalar_lea.hbm %s6776_s14, 256 }
  0xc5   : > { %p6850_p9 = pneg %p6849_p3  ;;  %p5711_p10 = scmp.lt.s32.totalorder %s601_s13, %s6776_s14 }
  0xc6   : > { %p5712_p0 = scmp.lt.s32.totalorder %s5710_s18, %s5705_s3 }
  0xc7   : > { %p5708_p7 = pnand %p5706_p2, %p6850_p9 }
  0xc8   : > { %p5713_p13 = por %p5712_p0, %p5711_p10 }
  0xc9   : > { %p5709_p12 = pneg %p5708_p7 }
  0xcb   : > { %p5714_p1 = pnand %p5713_p13, %p5709_p12 }
  0xcd   : > { %5717 = shalt.err (!%p5714_p1)
}
  0xce   : > { %s5718_s16 = scalar_lea.vmem %s604_s11, 256  ;;  %p6851_p6 = pmov %p6850_p9 }
  0xcf   : > { %p5719_p5 = scmp.ne.s32.totalorder %s604_s11, %s5718_s16  ;;  %s5849_s25 = smov [#allocation18]  }
  0xd0   : > { %s5723_s4 = sshll.u32 %s5849_s25, 4  ;;  %s5724_s4 = int_to_ptr.vmem [resolvable:$false] %s5723_s4 }
  0xd1   : > { %p5721_p11 = pnand %p5719_p5, %p6851_p6  ;;  %s5725_s1 = scalar_lea.vmem %s5724_s4, 512 }
  0xd2   : > { %p5726_p4 = scmp.lt.s32.totalorder %s604_s11, %s5724_s4  ;;  %p5727_p2 = scmp.lt.s32.totalorder %s5725_s1, %s5718_s16 }
  0xd3   : > { %p5722_p8 = pneg %p5721_p11 }
  0xd4   : > { %p5728_p9 = por %p5727_p2, %p5726_p4 }
  0xd6   : > { %p5729_p7 = pnand %p5728_p9, %p5722_p8 }
  0xd8   : > { %5732 = shalt.err (!%p5729_p7)
}
  0xd9   : > { %5119 = dma.hbm_to_vmem [thread:$0]  (!%p6849_p3), %s601_s13, 256, %s604_s11, %s6078_s2  }
  0xda   : > { %p6852_p12 = scmp.ne.s32.totalorder %s6818_s28, 0 }
  0xdb   : > { %s614_s23 = sand.u32 (!%p6852_p12), 1, %s5829_s22   ;;  %p6853_p10 = scmp.ne.s32.totalorder (!%p6852_p12), %s6840_s6, 0 }
  0xdc   : > { %612 = sbr.rel (%p6852_p12) target bundleno = 2039 (0x7f7), region = 80  ;;  %s4359_s18 = sshll.u32 (!%p6852_p12), %s614_s23, 10 }
  0xdd   : > { %s615_s30 = scalar_lea.sflag (!%p6852_p12), [#allocation5], %s614_s23  ;;  %s6234_s26 = scalar_lea.vmem (!%p6852_p12), [#allocation4], %s4359_s18 }
  0xe1   : > { %5788 = dma.done.wait (%p6853_p10), %s615_s30, 16384  }
  0xe2   : > { %5790 = vsyncadd (%p6853_p10), %s615_s30, 4294950912  ;;  %p6854_p0 = scmp.eq.s32.totalorder %s5970_s27, 0 }
  0xe4   : > { %5792 = dma.done.wait (%p6854_p0), [#allocation8], 32   ;;  %p6855_p3 = pmov %p6854_p0 }
  0xe5   : > { %p6856_p13 = pmov %p6854_p0 }
  0xe6   : > { %5794 = vsyncadd (%p6855_p3), [#allocation8], 4294967264 }
  0xe7   : > { %5796 = dma.done.wait (%p6856_p13), [#allocation11], 32   ;;  %p6857_p1 = pmov %p6854_p0 }
  0xe8   : > { %p6858_p5 = pmov %p6854_p0 }
  0xe9   : > { %5798 = vsyncadd (%p6857_p1), [#allocation11], 4294967264 }
  0xea   : > { %5800 = dma.done.wait (%p6858_p5), [#allocation14], 576   ;;  %p6859_p6 = pmov %p6854_p0 }
  0xeb   : > { %s647_s28 = sand.u32 1, %s5970_s27   ;;  %s6254_s9 = sand.u32 1, %s5817_s19  }
  0xec   : > { %5802 = vsyncadd (%p6859_p6), [#allocation14], 4294966720  ;;  %s4366_s2 = sshll.u32 %s6254_s9, 10  ;;  %s648_s6 = scalar_lea.sflag [#allocation17], %s647_s28 }
  0xed   : > { %s6257_s10 = scalar_lea.vmem [#allocation16], %s4366_s2  ;;  %p6860_p11 = scmp.ne.s32.totalorder %s6826_s17, 0 }
  0xef   : > { %5804 = dma.done.wait (%p6860_p11), %s648_s6, 16640  }
  0xf0   : > { %5806 = vsyncadd (%p6860_p11), %s648_s6, 4294950656  ;;  %s4367_s0 = sshll.u32 %s6254_s9, 4  ;;  %s4368_s29 = sshll.u32 %s6254_s9, 7 }
  0xf1   : > { %s4369_s11 = sadd.s32 4294967295, %s5970_s27  ;;  %s6861_s3 = sld [smem:[#allocation44_spill]] }
  0xf2   : > { %p732_p8 = scmp.gt.s32.totalorder %s4369_s11, 0  ;;  %s6274_s17 = scalar_lea.vmem [#allocation18], %s4367_s0 }
  0xf3   : > { %s6276_s5 = scalar_lea.vmem [#allocation19], %s4368_s29  ;;  %p6862_p2 = scmp.ne.s32.totalorder %s5970_s27, 0 }
  0xf4   : > { %s6887_s11 = smov (!%p732_p8, %s4369_s11), 0 }
  0xf5   : > { %s4370_s12 = sshll.u32 %s6887_s11, 4  ;;  %754 = sbr.rel (%p6862_p2) target bundleno = 252 (0xfc), region = 120 }
  0xf6   : > { %p735_p4 = scmp.lt.s32.totalorder %s4370_s12, 15 }
  0xf8   : > { %s6889_s12 = smov (!%p735_p4, %s4370_s12), 15 }
  0xf9   : > { %s6272_s8 = scalar_lea.vmem %s6861_s3, %s6889_s12 }
  0xfa   : > { %v5850_v0 = vmov 0.0  }
  0xfb   : > { %755 = vst [vmem:[#allocation2] sm:$0xff] %v5850_v0 }
  0xfc PF: > { %p4372_p9 = scmp.ge.s32.totalorder %s5970_s27, 1 }
  0xfd   : > { %s4373_s16 = sshll.u32 (!%p4372_p9), %s5970_s27, 11  ;;  %s6863_s18 = sld [smem:[#allocation31_spill]] (!%p4372_p9) }
  0xfe   : > { %759 = sbr.rel (%p4372_p9) target bundleno = 593 (0x251), region = 124  ;;  %s761_s25 = sshra.s32 (!%p4372_p9), %s4373_s16, 7 }
  0xff   : > { %s4374_s4 = sshll.u32 (!%p4372_p9), %s761_s25, 3 }
 0x103   : > { %v5205_v1 = vld [vmem:[%s6234_s26 + $0x78] sm:$0xff]   ;;  %v5209_v5 = vld [vmem:[%s6234_s26 + $0x70] sm:$0xff]   ;;  %v5213_v9 = vld [vmem:[%s6234_s26 + $0x68] sm:$0xff]   ;;  %s6315_s30 = scalar_lea.vmem %s6863_s18, %s4374_s4 }
 0x104   : > { %v5206_v2 = vld [vmem:[%s6234_s26 + $0xf8] sm:$0xff]   ;;  %4668 = vmatprep.subr.bf16.mxu0 %v5205_v1  ;;  %v5210_v6 = vld [vmem:[%s6234_s26 + $0xf0] sm:$0xff]   ;;  %v5214_v10 = vld [vmem:[%s6234_s26 + $0xe8] sm:$0xff]  }
 0x105   : > { %v5207_v3 = vld [vmem:[%s6234_s26 + $0x38] sm:$0xff]   ;;  %4690 = vmatprep.subr.bf16.mxu1 %v5206_v2  ;;  %v5211_v7 = vld [vmem:[%s6234_s26 + $0x30] sm:$0xff]   ;;  %v5215_v11 = vld [vmem:[%s6234_s26 + $0x28] sm:$0xff]  }
 0x106   : > { %v5208_v4 = vld [vmem:[%s6234_s26 + $0xb8] sm:$0xff]   ;;  %4669 = vmatpush3.bf16.msra.mxu0 %v5207_v3  ;;  %v5212_v8 = vld [vmem:[%s6234_s26 + $0xb0] sm:$0xff]   ;;  %v5216_v12 = vld [vmem:[%s6234_s26 + $0xa8] sm:$0xff]  }
 0x107   : > { %4691 = vmatpush3.bf16.msra.mxu1 %v5208_v4  ;;  %4670 = vmatprep.subr.bf16.mxu0 %v5209_v5  ;;  %v5217_v13 = vld [vmem:[%s6234_s26 + $0x60] sm:$0xff]   ;;  %v5221_v17 = vld [vmem:[%s6234_s26 + $0x58] sm:$0xff]   ;;  %v5225_v21 = vld [vmem:[%s6234_s26 + $0x50] sm:$0xff]  }
 0x108   : > { %4692 = vmatprep.subr.bf16.mxu1 %v5210_v6  ;;  %v5218_v14 = vld [vmem:[%s6234_s26 + $0xe0] sm:$0xff]   ;;  %v5222_v18 = vld [vmem:[%s6234_s26 + $0xd8] sm:$0xff]   ;;  %v5226_v22 = vld [vmem:[%s6234_s26 + $0xd0] sm:$0xff]  }
 0x109   : > { %v5219_v15 = vld [vmem:[%s6234_s26 + $0x20] sm:$0xff]   ;;  %v5223_v19 = vld [vmem:[%s6234_s26 + $0x18] sm:$0xff]   ;;  %v5227_v23 = vld [vmem:[%s6234_s26 + $0x10] sm:$0xff]  }
 0x10a   : > { %4671 = vmatpush3.bf16.msra.mxu0 %v5211_v7  ;;  %v5220_v16 = vld [vmem:[%s6234_s26 + $0xa0] sm:$0xff]   ;;  %v5224_v20 = vld [vmem:[%s6234_s26 + $0x98] sm:$0xff]   ;;  %v5228_v24 = vld [vmem:[%s6234_s26 + $0x90] sm:$0xff]  }
 0x10b   : > { %4693 = vmatpush3.bf16.msra.mxu1 %v5212_v8  ;;  %4672 = vmatprep.subr.bf16.mxu0 %v5213_v9  ;;  %v5229_v25 = vld [vmem:[%s6234_s26 + $0x48] sm:$0xff]   ;;  %v5233_v29 = vld [vmem:[%s6234_s26 + $0x40] sm:$0xff]   ;;  %v766_v33 = vld [vmem:[%s6315_s30 + $0x8] sm:$0xff] }
 0x10c   : > { %4694 = vmatprep.subr.bf16.mxu1 %v5214_v10  ;;  %v5230_v26 = vld [vmem:[%s6234_s26 + $0xc8] sm:$0xff]   ;;  %v5234_v30 = vld [vmem:[%s6234_s26 + $0xc0] sm:$0xff]   ;;  %v765_v35 = vld [vmem:[%s6315_s30] sm:$0xff]  ;;  %v782_v36 = vpack.c.bf16 %v766_v33, %v766_v33 }
 0x10d   : > { %v5231_v27 = vld [vmem:[%s6234_s26 + $0x8] sm:$0xff]   ;;  %v5235_v31 = vld [vmem:[%s6234_s26] sm:$0xff]   ;;  %v781_v38 = vpack.c.bf16 %v765_v35, %v765_v35  ;;  %v5237_v41 = vld [vmem:[%s6234_s26 + $0x178] sm:$0xff]  }
 0x10e   : > { %4673 = vmatpush3.bf16.msra.mxu0 %v5215_v11  ;;  %v5232_v28 = vld [vmem:[%s6234_s26 + $0x88] sm:$0xff]   ;;  %v5236_v32 = vld [vmem:[%s6234_s26 + $0x80] sm:$0xff]   ;;  %1854 = vmatprep.mubr.bf16.mxu0 %v782_v36  ;;  %v5238_v42 = vld [vmem:[%s6234_s26 + $0x1f8] sm:$0xff]  }
 0x10f   : > { %4695 = vmatpush3.bf16.msra.mxu1 %v5216_v12  ;;  %4674 = vmatprep.subr.bf16.mxu0 %v5217_v13  ;;  %v768_v34 = vld [vmem:[%s6315_s30 + $0x18] sm:$0xff]  ;;  %v767_v39 = vld [vmem:[%s6315_s30 + $0x10] sm:$0xff]  ;;  %v5239_v43 = vld [vmem:[%s6234_s26 + $0x138] sm:$0xff]  }
 0x110   : > { %4696 = vmatprep.subr.bf16.mxu1 %v5218_v14  ;;  %v784_v37 = vpack.c.bf16 %v768_v34, %v768_v34  ;;  %v783_v40 = vpack.c.bf16 %v767_v39, %v767_v39  ;;  %v5240_v44 = vld [vmem:[%s6234_s26 + $0x1b8] sm:$0xff]   ;;  %v5241_v45 = vld [vmem:[%s6234_s26 + $0x170] sm:$0xff]   ;;  %v5245_v49 = vld [vmem:[%s6234_s26 + $0x168] sm:$0xff]  }
 0x111   : > { %v5242_v46 = vld [vmem:[%s6234_s26 + $0x1f0] sm:$0xff]   ;;  %v5246_v50 = vld [vmem:[%s6234_s26 + $0x1e8] sm:$0xff]   ;;  %v5249_v53 = vld [vmem:[%s6234_s26 + $0x160] sm:$0xff]  }
 0x112   : > { %4675 = vmatpush3.bf16.msra.mxu0 %v5219_v15  ;;  %1894 = vmatprep.mubr.bf16.mxu1 %v784_v37  ;;  %v5243_v47 = vld [vmem:[%s6234_s26 + $0x130] sm:$0xff]   ;;  %v5247_v51 = vld [vmem:[%s6234_s26 + $0x128] sm:$0xff]   ;;  %v5250_v54 = vld [vmem:[%s6234_s26 + $0x1e0] sm:$0xff]  }
 0x113   : > { %4697 = vmatpush3.bf16.msra.mxu1 %v5220_v16  ;;  %4676 = vmatprep.subr.bf16.mxu0 %v5221_v17  ;;  %v5244_v48 = vld [vmem:[%s6234_s26 + $0x1b0] sm:$0xff]   ;;  %v5248_v52 = vld [vmem:[%s6234_s26 + $0x1a8] sm:$0xff]   ;;  %v5251_v55 = vld [vmem:[%s6234_s26 + $0x120] sm:$0xff]  }
 0x114   : > { %4698 = vmatprep.subr.bf16.mxu1 %v5222_v18  ;;  %v5252_v56 = vld [vmem:[%s6234_s26 + $0x1a0] sm:$0xff]   ;;  %v5253_v57 = vld [vmem:[%s6234_s26 + $0x158] sm:$0xff]   ;;  %v5257_v61 = vld [vmem:[%s6234_s26 + $0x150] sm:$0xff]  }
 0x115   : > { %v5254_v58 = vld [vmem:[%s6234_s26 + $0x1d8] sm:$0xff]   ;;  %v5258_v62 = vld [vmem:[%s6234_s26 + $0x1d0] sm:$0xff]   ;;  %v5261_v1 = vld [vmem:[%s6234_s26 + $0x148] sm:$0xff]  }
 0x116   : > { %4677 = vmatpush3.bf16.msra.mxu0 %v5223_v19  ;;  %v5255_v59 = vld [vmem:[%s6234_s26 + $0x118] sm:$0xff]   ;;  %v5259_v63 = vld [vmem:[%s6234_s26 + $0x110] sm:$0xff]   ;;  %v5262_v2 = vld [vmem:[%s6234_s26 + $0x1c8] sm:$0xff]  }
 0x117   : > { %4699 = vmatpush3.bf16.msra.mxu1 %v5224_v20  ;;  %4678 = vmatprep.subr.bf16.mxu0 %v5225_v21  ;;  %v5256_v60 = vld [vmem:[%s6234_s26 + $0x198] sm:$0xff]   ;;  %v5260_v0 = vld [vmem:[%s6234_s26 + $0x190] sm:$0xff]   ;;  %v5263_v3 = vld [vmem:[%s6234_s26 + $0x108] sm:$0xff]  }
 0x118   : > { %4700 = vmatprep.subr.bf16.mxu1 %v5226_v22  ;;  %v5264_v4 = vld [vmem:[%s6234_s26 + $0x188] sm:$0xff]   ;;  %v5265_v5 = vld [vmem:[%s6234_s26 + $0x140] sm:$0xff]   ;;  %v770_v9 = vld [vmem:[%s6315_s30 + $0x28] sm:$0xff] }
 0x119   : > { %v5266_v6 = vld [vmem:[%s6234_s26 + $0x1c0] sm:$0xff]   ;;  %v772_v10 = vld [vmem:[%s6315_s30 + $0x38] sm:$0xff]  ;;  %v786_v11 = vpack.c.bf16 %v770_v9, %v770_v9  ;;  %v769_v13 = vld [vmem:[%s6315_s30 + $0x20] sm:$0xff] }
 0x11a   : > { %4679 = vmatpush3.bf16.msra.mxu0 %v5227_v23  ;;  %v5267_v7 = vld [vmem:[%s6234_s26 + $0x100] sm:$0xff]   ;;  %v788_v12 = vpack.c.bf16 %v772_v10, %v772_v10  ;;  %v785_v15 = vpack.c.bf16 %v769_v13, %v769_v13  ;;  %v5269_v17 = vld [vmem:[%s6234_s26 + $0x278] sm:$0xff]   ;;  %v5273_v21 = vld [vmem:[%s6234_s26 + $0x270] sm:$0xff]  }
 0x11b   : > { %4701 = vmatpush3.bf16.msra.mxu1 %v5228_v24  ;;  %4680 = vmatprep.subr.bf16.mxu0 %v5229_v25  ;;  %v5268_v8 = vld [vmem:[%s6234_s26 + $0x180] sm:$0xff]   ;;  %v5270_v18 = vld [vmem:[%s6234_s26 + $0x2f8] sm:$0xff]   ;;  %v5274_v22 = vld [vmem:[%s6234_s26 + $0x2f0] sm:$0xff]  }
 0x11c   : > { %4702 = vmatprep.subr.bf16.mxu1 %v5230_v26  ;;  %v771_v14 = vld [vmem:[%s6315_s30 + $0x30] sm:$0xff]  ;;  %v5271_v19 = vld [vmem:[%s6234_s26 + $0x238] sm:$0xff]   ;;  %v5275_v23 = vld [vmem:[%s6234_s26 + $0x230] sm:$0xff]  }
 0x11d   : > { %v787_v16 = vpack.c.bf16 %v771_v14, %v771_v14  ;;  %v5272_v20 = vld [vmem:[%s6234_s26 + $0x2b8] sm:$0xff]   ;;  %v5276_v24 = vld [vmem:[%s6234_s26 + $0x2b0] sm:$0xff]   ;;  %v5277_v25 = vld [vmem:[%s6234_s26 + $0x268] sm:$0xff]  }
 0x11e   : > { %4681 = vmatpush3.bf16.msra.mxu0 %v5231_v27  ;;  %v5278_v26 = vld [vmem:[%s6234_s26 + $0x2e8] sm:$0xff]   ;;  %v5285_v33 = vld [vmem:[%s6234_s26 + $0x258] sm:$0xff]   ;;  %v5289_v37 = vld [vmem:[%s6234_s26 + $0x250] sm:$0xff]  }
 0x11f   : > { %4703 = vmatpush3.bf16.msra.mxu1 %v5232_v28  ;;  %4682 = vmatprep.subr.bf16.mxu0 %v5233_v29  ;;  %v5279_v27 = vld [vmem:[%s6234_s26 + $0x228] sm:$0xff]   ;;  %v5281_v29 = vld [vmem:[%s6234_s26 + $0x260] sm:$0xff]   ;;  %v5286_v34 = vld [vmem:[%s6234_s26 + $0x2d8] sm:$0xff]  }
 0x120   : > { %4704 = vmatprep.subr.bf16.mxu1 %v5234_v30  ;;  %v5280_v28 = vld [vmem:[%s6234_s26 + $0x2a8] sm:$0xff]   ;;  %v5282_v30 = vld [vmem:[%s6234_s26 + $0x2e0] sm:$0xff]   ;;  %v5287_v35 = vld [vmem:[%s6234_s26 + $0x218] sm:$0xff]  }
 0x121   : > { %v5288_v36 = vld [vmem:[%s6234_s26 + $0x298] sm:$0xff]   ;;  %v5291_v39 = vld [vmem:[%s6234_s26 + $0x210] sm:$0xff]  }
 0x122   : > { %4683 = vmatpush3.bf16.msra.mxu0 %v5235_v31  ;;  %v5283_v31 = vld [vmem:[%s6234_s26 + $0x220] sm:$0xff]   ;;  %v5317_v9 = vld [vmem:[%s6234_s26 + $0x358] sm:$0xff]   ;;  %v5321_v13 = vld [vmem:[%s6234_s26 + $0x350] sm:$0xff]  }
 0x123   : > { %4705 = vmatpush3.bf16.msra.mxu1 %v5236_v32  ;;  %4712 = vmatprep.subr.bf16.mxu0 %v5237_v41  ;;  %v5284_v32 = vld [vmem:[%s6234_s26 + $0x2a0] sm:$0xff]   ;;  %v5293_v41 = vld [vmem:[%s6234_s26 + $0x248] sm:$0xff]   ;;  %v5318_v10 = vld [vmem:[%s6234_s26 + $0x3d8] sm:$0xff]  }
 0x124   : > { %4734 = vmatprep.subr.bf16.mxu1 %v5238_v42  ;;  %v5294_v42 = vld [vmem:[%s6234_s26 + $0x2c8] sm:$0xff]   ;;  %v5322_v14 = vld [vmem:[%s6234_s26 + $0x3d0] sm:$0xff]  }
 0x125   : > { %1855 = vmatmul.mubr.bf16.vlgmr.msra.gmra.mxu0 %v781_v38  ;;  %v5290_v38 = vld [vmem:[%s6234_s26 + $0x2d0] sm:$0xff]  }
 0x126   : > { %1895 = vmatmul.mubr.bf16.vlgmr.msra.gmra.mxu1 %v783_v40  ;;  %4713 = vmatpush3.bf16.msra.mxu0 %v5239_v43  ;;  %v5292_v40 = vld [vmem:[%s6234_s26 + $0x290] sm:$0xff]   ;;  %v5295_v43 = vld [vmem:[%s6234_s26 + $0x208] sm:$0xff]  }
 0x127   : > { %4735 = vmatpush3.bf16.msra.mxu1 %v5240_v44  ;;  %4714 = vmatprep.subr.bf16.mxu0 %v5241_v45  ;;  %v5296_v44 = vld [vmem:[%s6234_s26 + $0x288] sm:$0xff]   ;;  %v5297_v45 = vld [vmem:[%s6234_s26 + $0x240] sm:$0xff]  }
 0x128   : > { %4736 = vmatprep.subr.bf16.mxu1 %v5242_v46  ;;  %1934 = vmatprep.mubr.bf16.mxu0 %v786_v11  ;;  %v5298_v46 = vld [vmem:[%s6234_s26 + $0x2c0] sm:$0xff]   ;;  %v5319_v11 = vld [vmem:[%s6234_s26 + $0x318] sm:$0xff]  }
 0x129   : > { %1974 = vmatprep.mubr.bf16.mxu1 %v788_v12  ;;  %v5320_v12 = vld [vmem:[%s6234_s26 + $0x398] sm:$0xff]  }
 0x12a   : > { %4715 = vmatpush3.bf16.msra.mxu0 %v5243_v47  ;;  %v5299_v47 = vld [vmem:[%s6234_s26 + $0x200] sm:$0xff]  }
 0x12b   : > { %4737 = vmatpush3.bf16.msra.mxu1 %v5244_v48  ;;  %4716 = vmatprep.subr.bf16.mxu0 %v5245_v49  ;;  %v5300_v48 = vld [vmem:[%s6234_s26 + $0x280] sm:$0xff]   ;;  %v774_v49 = vld [vmem:[%s6315_s30 + $0x48] sm:$0xff] }
 0x12c   : > { %4738 = vmatprep.subr.bf16.mxu1 %v5246_v50  ;;  %v790_v50 = vpack.c.bf16 %v774_v49, %v774_v49 }
 0x12e   : > { %4717 = vmatpush3.bf16.msra.mxu0 %v5247_v51  ;;  %v776_v51 = vld [vmem:[%s6315_s30 + $0x58] sm:$0xff] }
 0x12f   : > { %4739 = vmatpush3.bf16.msra.mxu1 %v5248_v52  ;;  %4718 = vmatprep.subr.bf16.mxu0 %v5249_v53  ;;  %v773_v52 = vld [vmem:[%s6315_s30 + $0x40] sm:$0xff]  ;;  %v775_v53 = vld [vmem:[%s6315_s30 + $0x50] sm:$0xff] }
 0x130   : > { %4740 = vmatprep.subr.bf16.mxu1 %v5250_v54  ;;  %v792_v54 = vpack.c.bf16 %v776_v51, %v776_v51 }
 0x132   : > { %4719 = vmatpush3.bf16.msra.mxu0 %v5251_v55  ;;  %v789_v55 = vpack.c.bf16 %v773_v52, %v773_v52 }
 0x133   : > { %4741 = vmatpush3.bf16.msra.mxu1 %v5252_v56  ;;  %4720 = vmatprep.subr.bf16.mxu0 %v5253_v57  ;;  %v791_v56 = vpack.c.bf16 %v775_v53, %v775_v53  ;;  %v5301_v57 = vld [vmem:[%s6234_s26 + $0x378] sm:$0xff]  }
 0x134   : > { %4742 = vmatprep.subr.bf16.mxu1 %v5254_v58  ;;  %v5302_v58 = vld [vmem:[%s6234_s26 + $0x3f8] sm:$0xff]  }
 0x136   : > { %4721 = vmatpush3.bf16.msra.mxu0 %v5255_v59  ;;  %v5303_v59 = vld [vmem:[%s6234_s26 + $0x338] sm:$0xff]  }
 0x137   : > { %4743 = vmatpush3.bf16.msra.mxu1 %v5256_v60  ;;  %4722 = vmatprep.subr.bf16.mxu0 %v5257_v61  ;;  %v5304_v60 = vld [vmem:[%s6234_s26 + $0x3b8] sm:$0xff]   ;;  %v5305_v61 = vld [vmem:[%s6234_s26 + $0x370] sm:$0xff]  }
 0x138   : > { %4744 = vmatprep.subr.bf16.mxu1 %v5258_v62  ;;  %v5306_v62 = vld [vmem:[%s6234_s26 + $0x3f0] sm:$0xff]  }
 0x13a   : > { %4723 = vmatpush3.bf16.msra.mxu0 %v5259_v63  ;;  %v5307_v63 = vld [vmem:[%s6234_s26 + $0x330] sm:$0xff]  }
 0x13b   : > { %4745 = vmatpush3.bf16.msra.mxu1 %v5260_v0  ;;  %4724 = vmatprep.subr.bf16.mxu0 %v5261_v1  ;;  %v5308_v0 = vld [vmem:[%s6234_s26 + $0x3b0] sm:$0xff]   ;;  %v5309_v1 = vld [vmem:[%s6234_s26 + $0x368] sm:$0xff]  }
 0x13c   : > { %4746 = vmatprep.subr.bf16.mxu1 %v5262_v2  ;;  %v5310_v2 = vld [vmem:[%s6234_s26 + $0x3e8] sm:$0xff]  }
 0x13e   : > { %4725 = vmatpush3.bf16.msra.mxu0 %v5263_v3  ;;  %v5311_v3 = vld [vmem:[%s6234_s26 + $0x328] sm:$0xff]  }
 0x13f   : > { %4747 = vmatpush3.bf16.msra.mxu1 %v5264_v4  ;;  %4726 = vmatprep.subr.bf16.mxu0 %v5265_v5  ;;  %v5312_v4 = vld [vmem:[%s6234_s26 + $0x3a8] sm:$0xff]   ;;  %v5313_v5 = vld [vmem:[%s6234_s26 + $0x360] sm:$0xff]  }
 0x140   : > { %4748 = vmatprep.subr.bf16.mxu1 %v5266_v6  ;;  %v5314_v6 = vld [vmem:[%s6234_s26 + $0x3e0] sm:$0xff]  }
 0x142   : > { %4727 = vmatpush3.bf16.msra.mxu0 %v5267_v7  ;;  %v5315_v7 = vld [vmem:[%s6234_s26 + $0x320] sm:$0xff]  }
 0x143   : > { %4749 = vmatpush3.bf16.msra.mxu1 %v5268_v8  ;;  %4756 = vmatprep.subr.bf16.mxu0 %v5269_v17  ;;  %v5316_v8 = vld [vmem:[%s6234_s26 + $0x3a0] sm:$0xff]   ;;  %v5325_v17 = vld [vmem:[%s6234_s26 + $0x348] sm:$0xff]  }
 0x144   : > { %4778 = vmatprep.subr.bf16.mxu1 %v5270_v18  ;;  %v5326_v18 = vld [vmem:[%s6234_s26 + $0x3c8] sm:$0xff]  }
 0x145   : > { %1935 = vmatmul.mubr.bf16.vlgmr.msra.gmra.mxu0 %v785_v15  ;;  %v5323_v15 = vld [vmem:[%s6234_s26 + $0x310] sm:$0xff]  }
 0x146   : > { %1975 = vmatmul.mubr.bf16.vlgmr.msra.gmra.mxu1 %v787_v16  ;;  %4757 = vmatpush3.bf16.msra.mxu0 %v5271_v19  ;;  %v5324_v16 = vld [vmem:[%s6234_s26 + $0x390] sm:$0xff]   ;;  %v5327_v19 = vld [vmem:[%s6234_s26 + $0x308] sm:$0xff]  }
 0x147   : > { %4779 = vmatpush3.bf16.msra.mxu1 %v5272_v20  ;;  %4758 = vmatprep.subr.bf16.mxu0 %v5273_v21  ;;  %v5328_v20 = vld [vmem:[%s6234_s26 + $0x388] sm:$0xff]   ;;  %v5329_v21 = vld [vmem:[%s6234_s26 + $0x340] sm:$0xff]  }
 0x148   : > { %4780 = vmatprep.subr.bf16.mxu1 %v5274_v22  ;;  %2014 = vmatprep.mubr.bf16.mxu0 %v790_v50  ;;  %v5330_v22 = vld [vmem:[%s6234_s26 + $0x3c0] sm:$0xff]  }
 0x149   : > { %2054 = vmatprep.mubr.bf16.mxu1 %v792_v54 }
 0x14a   : > { %4759 = vmatpush3.bf16.msra.mxu0 %v5275_v23  ;;  %v5331_v23 = vld [vmem:[%s6234_s26 + $0x300] sm:$0xff]  }
 0x14b   : > { %4781 = vmatpush3.bf16.msra.mxu1 %v5276_v24  ;;  %4760 = vmatprep.subr.bf16.mxu0 %v5277_v25  ;;  %v5332_v24 = vld [vmem:[%s6234_s26 + $0x380] sm:$0xff]   ;;  %v778_v25 = vld [vmem:[%s6315_s30 + $0x68] sm:$0xff] }
 0x14c   : > { %4782 = vmatprep.subr.bf16.mxu1 %v5278_v26  ;;  %v780_v26 = vld [vmem:[%s6315_s30 + $0x78] sm:$0xff] }
 0x14e   : > { %4761 = vmatpush3.bf16.msra.mxu0 %v5279_v27  ;;  %v777_v27 = vld [vmem:[%s6315_s30 + $0x60] sm:$0xff] }
 0x14f   : > { %4783 = vmatpush3.bf16.msra.mxu1 %v5280_v28  ;;  %4762 = vmatprep.subr.bf16.mxu0 %v5281_v29  ;;  %v794_v28 = vpack.c.bf16 %v778_v25, %v778_v25  ;;  %v796_v29 = vpack.c.bf16 %v780_v26, %v780_v26 }
 0x150   : > { %4784 = vmatprep.subr.bf16.mxu1 %v5282_v30  ;;  %v793_v30 = vpack.c.bf16 %v777_v27, %v777_v27 }
 0x152   : > { %4763 = vmatpush3.bf16.msra.mxu0 %v5283_v31  ;;  %v779_v31 = vld [vmem:[%s6315_s30 + $0x70] sm:$0xff] }
 0x153   : > { %4785 = vmatpush3.bf16.msra.mxu1 %v5284_v32  ;;  %4764 = vmatprep.subr.bf16.mxu0 %v5285_v33  ;;  %v795_v32 = vpack.c.bf16 %v779_v31, %v779_v31 }
 0x154   : > { %4786 = vmatprep.subr.bf16.mxu1 %v5286_v34 }
 0x156   : > { %4765 = vmatpush3.bf16.msra.mxu0 %v5287_v35 }
 0x157   : > { %4787 = vmatpush3.bf16.msra.mxu1 %v5288_v36  ;;  %4766 = vmatprep.subr.bf16.mxu0 %v5289_v37 }
 0x158   : > { %4788 = vmatprep.subr.bf16.mxu1 %v5290_v38 }
 0x15a   : > { %4767 = vmatpush3.bf16.msra.mxu0 %v5291_v39 }
 0x15b   : > { %4789 = vmatpush3.bf16.msra.mxu1 %v5292_v40  ;;  %4768 = vmatprep.subr.bf16.mxu0 %v5293_v41 }
 0x15c   : > { %4790 = vmatprep.subr.bf16.mxu1 %v5294_v42 }
 0x15e   : > { %4769 = vmatpush3.bf16.msra.mxu0 %v5295_v43 }
 0x15f   : > { %4791 = vmatpush3.bf16.msra.mxu1 %v5296_v44  ;;  %4770 = vmatprep.subr.bf16.mxu0 %v5297_v45 }
 0x160   : > { %4792 = vmatprep.subr.bf16.mxu1 %v5298_v46 }
 0x162   : > { %4771 = vmatpush3.bf16.msra.mxu0 %v5299_v47 }
 0x163   : > { %4793 = vmatpush3.bf16.msra.mxu1 %v5300_v48  ;;  %4800 = vmatprep.subr.bf16.mxu0 %v5301_v57 }
 0x164   : > { %4822 = vmatprep.subr.bf16.mxu1 %v5302_v58 }
 0x165   : > { %2015 = vmatmul.mubr.bf16.vlgmr.msra.gmra.mxu0 %v789_v55 }
 0x166   : > { %2055 = vmatmul.mubr.bf16.vlgmr.msra.gmra.mxu1 %v791_v56  ;;  %4801 = vmatpush3.bf16.msra.mxu0 %v5303_v59 }
 0x167   : > { %4823 = vmatpush3.bf16.msra.mxu1 %v5304_v60  ;;  %4802 = vmatprep.subr.bf16.mxu0 %v5305_v61 }
 0x168   : > { %4824 = vmatprep.subr.bf16.mxu1 %v5306_v62  ;;  %2094 = vmatprep.mubr.bf16.mxu0 %v794_v28 }
 0x169   : > { %2134 = vmatprep.mubr.bf16.mxu1 %v796_v29 }
 0x16a   : > { %4803 = vmatpush3.bf16.msra.mxu0 %v5307_v63 }
 0x16b   : > { %4825 = vmatpush3.bf16.msra.mxu1 %v5308_v0  ;;  %4804 = vmatprep.subr.bf16.mxu0 %v5309_v1 }
 0x16c   : > { %4826 = vmatprep.subr.bf16.mxu1 %v5310_v2 }
 0x16e   : > { %4805 = vmatpush3.bf16.msra.mxu0 %v5311_v3 }
 0x16f   : > { %4827 = vmatpush3.bf16.msra.mxu1 %v5312_v4  ;;  %4806 = vmatprep.subr.bf16.mxu0 %v5313_v5 }
 0x170   : > { %4828 = vmatprep.subr.bf16.mxu1 %v5314_v6 }
 0x172   : > { %4807 = vmatpush3.bf16.msra.mxu0 %v5315_v7 }
 0x173   : > { %4829 = vmatpush3.bf16.msra.mxu1 %v5316_v8  ;;  %4808 = vmatprep.subr.bf16.mxu0 %v5317_v9 }
 0x174   : > { %4830 = vmatprep.subr.bf16.mxu1 %v5318_v10 }
 0x176   : > { %4809 = vmatpush3.bf16.msra.mxu0 %v5319_v11 }
 0x177   : > { %4831 = vmatpush3.bf16.msra.mxu1 %v5320_v12  ;;  %4810 = vmatprep.subr.bf16.mxu0 %v5321_v13  ;;  %v797_v13 = vld [vmem:[#allocation2] sm:$0xff] }
 0x178   : > { %4832 = vmatprep.subr.bf16.mxu1 %v5322_v14 }
 0x17a   : > { %4811 = vmatpush3.bf16.msra.mxu0 %v5323_v15 }
 0x17b   : > { %4833 = vmatpush3.bf16.msra.mxu1 %v5324_v16  ;;  %4812 = vmatprep.subr.bf16.mxu0 %v5325_v17 }
 0x17c   : > { %4834 = vmatprep.subr.bf16.mxu1 %v5326_v18 }
 0x17e   : > { %4813 = vmatpush3.bf16.msra.mxu0 %v5327_v19 }
 0x17f   : > { %4835 = vmatpush3.bf16.msra.mxu1 %v5328_v20  ;;  %4814 = vmatprep.subr.bf16.mxu0 %v5329_v21 }
 0x180   : > { %4836 = vmatprep.subr.bf16.mxu1 %v5330_v22 }
 0x182   : > { %4815 = vmatpush3.bf16.msra.mxu0 %v5331_v23 }
 0x183   : > { %4837 = vmatpush3.bf16.msra.mxu1 %v5332_v24 }
 0x185   : > { %2095 = vmatmul.mubr.bf16.vlgmr.msra.gmra.mxu0 %v793_v30 }
 0x186   : > { %2135 = vmatmul.mubr.bf16.vlgmr.msra.gmra.mxu1 %v795_v32 }
 0x1e5   : > { %v4684_v33 = vpop.f32.mrf.mxu0 }
 0x1e6   : > { %v4706_v34 = vpop.f32.mrf.mxu1 }
 0x1e7   : > { %v4685_v35 = vpop.f32.mrf.mxu0 }
 0x1e8   : > { %v4707_v36 = vpop.f32.mrf.mxu1  ;;  %v4686_v37 = vadd.f32 %v4685_v35, %v4684_v33 }
 0x1e9   : > { %v4708_v38 = vadd.f32 %v4707_v36, %v4706_v34  ;;  %v4687_v39 = vpop.f32.mrf.mxu0 }
 0x1ea   : > { %v4709_v40 = vpop.f32.mrf.mxu1 }
 0x1eb   : > { %v1897_v41 = vadd.f32 %v4708_v38, %v4686_v37  ;;  %v4688_v42 = vpop.f32.mrf.mxu0 }
 0x1ec   : > { %v4710_v43 = vpop.f32.mrf.mxu1 }
 0x205   : > { %v4728_v44 = vpop.f32.mrf.mxu0 }
 0x206   : > { %v4750_v45 = vpop.f32.mrf.mxu1 }
 0x207   : > { %v4729_v46 = vpop.f32.mrf.mxu0 }
 0x208   : > { %v4751_v47 = vpop.f32.mrf.mxu1  ;;  %v4730_v60 = vadd.f32 %v4729_v46, %v4728_v44 }
 0x209   : > { %v4731_v48 = vpop.f32.mrf.mxu0  ;;  %v4752_v62 = vadd.f32 %v4751_v47, %v4750_v45 }
 0x20a   : > { %v4753_v49 = vpop.f32.mrf.mxu1  ;;  %v1937_v61 = vadd.f32 %v4730_v60, %v1897_v41 }
 0x20b   : > { %v4732_v50 = vpop.f32.mrf.mxu0 }
 0x20c   : > { %v4754_v51 = vpop.f32.mrf.mxu1  ;;  %v1977_v0 = vadd.f32 %v4752_v62, %v1937_v61 }
 0x225   : > { %v4772_v52 = vpop.f32.mrf.mxu0 }
 0x226   : > { %v4794_v53 = vpop.f32.mrf.mxu1 }
 0x227   : > { %v4773_v54 = vpop.f32.mrf.mxu0 }
 0x228   : > { %v4795_v55 = vpop.f32.mrf.mxu1  ;;  %v4774_v63 = vadd.f32 %v4773_v54, %v4772_v52 }
 0x229   : > { %v4775_v56 = vpop.f32.mrf.mxu0  ;;  %v4796_v2 = vadd.f32 %v4795_v55, %v4794_v53 }
 0x22a   : > { %v4797_v57 = vpop.f32.mrf.mxu1  ;;  %v2017_v1 = vadd.f32 %v4774_v63, %v1977_v0 }
 0x22b   : > { %v4776_v58 = vpop.f32.mrf.mxu0 }
 0x22c   : > { %v4798_v59 = vpop.f32.mrf.mxu1  ;;  %v2057_v7 = vadd.f32 %v4796_v2, %v2017_v1 }
 0x245   : > { %v4816_v3 = vpop.f32.mrf.mxu0 }
 0x246   : > { %v4838_v4 = vpop.f32.mrf.mxu1 }
 0x247   : > { %v4817_v5 = vpop.f32.mrf.mxu0 }
 0x248   : > { %v4839_v6 = vpop.f32.mrf.mxu1  ;;  %v4818_v8 = vadd.f32 %v4817_v5, %v4816_v3 }
 0x249   : > { %v4819_v9 = vpop.f32.mrf.mxu0  ;;  %v4840_v12 = vadd.f32 %v4839_v6, %v4838_v4 }
 0x24a   : > { %v4841_v10 = vpop.f32.mrf.mxu1  ;;  %v2097_v11 = vadd.f32 %v4818_v8, %v2057_v7 }
 0x24b   : > { %v4820_v14 = vpop.f32.mrf.mxu0 }
 0x24c   : > { %v4842_v15 = vpop.f32.mrf.mxu1  ;;  %v2137_v16 = vadd.f32 %v4840_v12, %v2097_v11 }
 0x24e   : > { %v2142_v17 = vadd.f32 %v2137_v16, %v797_v13 }
 0x250   : > { %2143 = vst [vmem:[#allocation2] sm:$0xff] %v2142_v17 }
 0x251 PF: > { %p6864_p7 = scmp.ne.s32.totalorder %s5970_s27, 0 }
 0x252   : > { %s6865_s2 = sld [smem:[#allocation35_spill]] (!%p6864_p7) }
 0x253   : > { %2146 = sbr.rel (%p6864_p7) target bundleno = 1547 (0x60b), region = 128  ;;  %s6866_s6 = sld [smem:[#allocation37_spill]] (!%p6864_p7) }
 0x254   : > { %s6867_s4 = sld [smem:[#allocation40_spill]] (!%p6864_p7) }
 0x255   : > { %s6868_s18 = sld [smem:[#allocation42_spill]] (!%p6864_p7) }
 0x258   : > { %v5333_v18 = vld [vmem:[%s6865_s2 + $0x38] sm:$0xff]   ;;  %v5851_v19 = vmov 0.0   ;;  %v5334_v20 = vld [vmem:[%s6865_s2 + $0x30] sm:$0xff]   ;;  %vm5852_vm0 = vmmov 0   ;;  %v5335_v21 = vld [vmem:[%s6865_s2 + $0x28] sm:$0xff]   ;;  %vm2401_vm4 = vcmask 1043456  }
 0x259   : > { %5009 = vmatprep.subr.bf16.mxu0 %v5851_v19  ;;  %5029 = vmatprep.subr.bf16.mxu1 %v5851_v19  ;;  %v2147_v22 = vld [vmem:[#allocation2] sm:$0xff]  ;;  %v4504_v23 = vld [vmem:[#allocation7] ss:$0 sm:$0xff]  ;;  %v4505_v24 = vld [vmem:[#allocation9] ss:$0 sm:$0xff]  ;;  %vm2344_vm6 = vcmask 523264  }
 0x25a   : > { %5010 = vmatpush3.bf16.msra.mxu0 %v5333_v18  ;;  %5025 = vmatprep.mubr.msk.bf16.mxu0 %vm5852_vm0, %v5851_v19  ;;  %v5336_v25 = vld [vmem:[%s6865_s2 + $0x20] sm:$0xff]   ;;  %v2155_v26 = vmul.f32 %v4504_v23, %v2147_v22  ;;  %v5337_v28 = vld [vmem:[%s6865_s2 + $0x18] sm:$0xff]   ;;  %v5338_v31 = vld [vmem:[%s6865_s2 + $0x10] sm:$0xff]   ;;  %vm2397_vm7 = vcmask 64512  }
 0x25b   : > { %5011 = vmatprep.subr.bf16.mxu0 %v5851_v19  ;;  %5037 = vmatprep.mubr.msk.bf16.mxu1 %vm5852_vm0, %v5851_v19  ;;  %v5339_v32 = vld [vmem:[%s6865_s2 + $0x8] sm:$0xff]   ;;  %v5340_v33 = vld [vmem:[%s6865_s2] sm:$0xff]   ;;  %v5341_v45 = vld [vmem:[%s6866_s6 + $0x18] sm:$0xff]  }
 0x25c   : > { %v2163_v27 = vadd.f32 %v4505_v24, %v2155_v26  ;;  %5030 = vmatpush3.bf16.msra.mxu1 %v5341_v45  ;;  %v5342_v46 = vld [vmem:[%s6866_s6 + $0x10] sm:$0xff]   ;;  %v5343_v47 = vld [vmem:[%s6866_s6 + $0x8] sm:$0xff]   ;;  %v5344_v48 = vld [vmem:[%s6866_s6] sm:$0xff]  }
 0x25d   : > { %5031 = vmatprep.subr.bf16.mxu1 %v5851_v19  ;;  %v4506_v49 = vld [vmem:[#allocation10] ss:$0 sm:$0xff]  ;;  %v2389_v1 = vld [vmem:[#allocation13] sm:$0xf]  ;;  %v4515_v6 = vld [vmem:[#allocation12] ss:$0 sm:$0xff] }
 0x25e   : > { %5012 = vmatpush3.bf16.msra.mxu0 %v5334_v20  ;;  %v2165_v29 = vmin.f32 %v2163_v27, 20.0  ;;  %vm2164_vm2 = vcmp.gt.f32.partialorder %v2163_v27, 20.0  ;;  %v2403_v5 = vsel %vm2401_vm4, %v2389_v1, 0  ;;  %v5345_v13 = vld [vmem:[#allocation15 + $0x18] sm:$0xff]   ;;  %v5346_v14 = vld [vmem:[#allocation15 + $0x10] sm:$0xff]   ;;  %v5347_v15 = vld [vmem:[#allocation15 + $0x8] sm:$0xff]  }
 0x25f   : > { %5013 = vmatprep.subr.bf16.mxu0 %v5851_v19  ;;  %v5348_v16 = vld [vmem:[#allocation15] sm:$0xff]  }
 0x260   : > { %v2166_v30 = vmul.f32 1.442695, %v2165_v29  ;;  %5032 = vmatpush3.bf16.msra.mxu1 %v5342_v46  ;;  %v4521_v17 = vld [vmem:[%s6867_s4] ss:$0 sm:$0xff] }
 0x261   : > { %5033 = vmatprep.subr.bf16.mxu1 %v5851_v19 }
 0x262   : > { %5014 = vmatpush3.bf16.msra.mxu0 %v5335_v21  ;;  %5349 = vpow2.f32 %v2166_v30 }
 0x263   : > { %5015 = vmatprep.subr.bf16.mxu0 %v5851_v19 }
 0x264   : > { %5034 = vmatpush3.bf16.msra.mxu1 %v5343_v47 }
 0x265   : > { %5035 = vmatprep.subr.bf16.mxu1 %v5851_v19 }
 0x266   : > { %5016 = vmatpush3.bf16.msra.mxu0 %v5336_v25 }
 0x267   : > { %5017 = vmatprep.subr.bf16.mxu0 %v5851_v19 }
 0x268   : > { %5036 = vmatpush3.bf16.msra.mxu1 %v5344_v48 }
 0x269   : > { %5041 = vmatprep.subr.bf16.mxu1 %v5851_v19 }
 0x26a   : > { %5018 = vmatpush3.bf16.msra.mxu0 %v5337_v28 }
 0x26b   : > { %5019 = vmatprep.subr.bf16.mxu0 %v5851_v19 }
 0x26e   : > { %5020 = vmatpush3.bf16.msra.mxu0 %v5338_v31 }
 0x26f   : > { %5021 = vmatprep.subr.bf16.mxu0 %v5851_v19  ;;  %v5350_v34 = vpop.eup %5349 }
 0x270   : > { %v2168_v35 = vadd.f32 1.0, %v5350_v34  ;;  %v2171_v36 = vmul.f32 -0.5, %v5350_v34  ;;  %v2174_v38 = vand.u32 2147483647, %v5350_v34 }
 0x272   : > { %5022 = vmatpush3.bf16.msra.mxu0 %v5339_v32  ;;  %5351 = vlog2.f32 %v2168_v35  ;;  %v2172_v37 = vadd.f32 1.0, %v2171_v36  ;;  %vm2175_vm1 = vcmp.lt.f32.partialorder %v2174_v38, 0.0004427343  ;;  %v4523_v36 = vld [vmem:[%s6868_s18] ss:$0 sm:$0xff] }
 0x273   : > { %5023 = vmatprep.subr.bf16.mxu0 %v5851_v19 }
 0x274   : > { %v2173_v39 = vmul.f32 %v5350_v34, %v2172_v37 }
 0x276   : > { %5024 = vmatpush3.bf16.msra.mxu0 %v5340_v33 }
 0x27f   : > { %v5352_v40 = vpop.eup %5351 }
 0x280   : > { %v2170_v41 = vmul.f32 0.6931472, %v5352_v40 }
 0x282   : > { %v2176_v42 = vsel %vm2175_vm1, %v2173_v39, %v2170_v41 }
 0x283   : > { %v2177_v43 = vsel %vm2164_vm2, %v2163_v27, %v2176_v42 }
 0x284   : > { %v2178_v44 = vpack.c.bf16 %v2177_v43, %v2177_v43 }
 0x286   : > { %5026 = vmatmul.mubr.bf16.vlgmr.msra.gmra.mxu0 %v2178_v44 }
 0x346   : > { %v2284_v50 = vpop.f32.mrf.mxu0 }
 0x347   : > { %v2285_v51 = vadd.f32 %v4506_v49, %v2284_v50 }
 0x348   : > { %v5027_v52 = vpop.f32.mrf.mxu0 }
 0x349   : > { %v2291_v53 = vmin.f32 %v2285_v51, 20.0  ;;  %vm2290_vm5 = vcmp.gt.f32.partialorder %v2285_v51, 20.0 }
 0x34a   : > { %v2287_v54 = vpop.f32.mrf.mxu0 }
 0x34b   : > { %v2292_v55 = vmul.f32 1.442695, %v2291_v53 }
 0x34c   : > { %v5028_v56 = vpop.f32.mrf.mxu0 }
 0x34d   : > { %5353 = vpow2.f32 %v2292_v55 }
 0x35a   : > { %v5354_v57 = vpop.eup %5353 }
 0x35b   : > { %v2294_v58 = vadd.f32 1.0, %v5354_v57  ;;  %v2297_v59 = vmul.f32 -0.5, %v5354_v57  ;;  %v2300_v61 = vand.u32 2147483647, %v5354_v57 }
 0x35d   : > { %5355 = vlog2.f32 %v2294_v58  ;;  %v2298_v60 = vadd.f32 1.0, %v2297_v59  ;;  %vm2301_vm3 = vcmp.lt.f32.partialorder %v2300_v61, 0.0004427343 }
 0x35f   : > { %v2299_v0 = vmul.f32 %v5354_v57, %v2298_v60 }
 0x36a   : > { %v5356_v62 = vpop.eup %5355 }
 0x36b   : > { %v2296_v63 = vmul.f32 0.6931472, %v5356_v62 }
 0x36d   : > { %v2302_v2 = vsel %vm2301_vm3, %v2299_v0, %v2296_v63 }
 0x36e   : > { %v2303_v3 = vsel %vm2290_vm5, %v2285_v51, %v2302_v2 }
 0x36f   : > { %v2304_v4 = vpack.c.bf16 %v2303_v3, %v2303_v3 }
 0x371   : > { %5038 = vmatmul.mubr.msk.bf16.vlgmr.msra.gmra.mxu1 %vm2344_vm6, %v2304_v4 }
 0x372   : > { %5042 = vmatpush3.bf16.msra.mxu1 %v2403_v5  ;;  %5043 = vmatprep.mubr.msk.bf16.mxu1 %vm5852_vm0, %v5851_v19 }
 0x373   : > { %5047 = vmatprep.subr.bf16.mxu1 %v5851_v19 }
 0x431   : > { %v2382_v7 = vpop.f32.mrf.mxu1 }
 0x432   : > { %v2383_v8 = vadd.f32 %v4515_v6, %v2382_v7 }
 0x433   : > { %v5039_v9 = vpop.f32.mrf.mxu1 }
 0x434   : > { %v2388_v10 = vpack.c.bf16 %v2383_v8, %v2383_v8 }
 0x435   : > { %v2385_v11 = vpop.f32.mrf.mxu1 }
 0x436   : > { %5044 = vmatmul.mubr.msk.bf16.vlgmr.msra.gmra.mxu1 %vm2397_vm7, %v2388_v10 }
 0x437   : > { %v5040_v12 = vpop.f32.mrf.mxu1  ;;  %5055 = vmatprep.mubr.msk.bf16.mxu1 %vm5852_vm0, %v5851_v19  ;;  %5048 = vmatpush3.bf16.msra.mxu1 %v5345_v13 }
 0x438   : > { %5049 = vmatprep.subr.bf16.mxu1 %v5851_v19 }
 0x43b   : > { %5050 = vmatpush3.bf16.msra.mxu1 %v5346_v14 }
 0x43c   : > { %5051 = vmatprep.subr.bf16.mxu1 %v5851_v19 }
 0x43f   : > { %5052 = vmatpush3.bf16.msra.mxu1 %v5347_v15 }
 0x440   : > { %5053 = vmatprep.subr.bf16.mxu1 %v5851_v19 }
 0x443   : > { %5054 = vmatpush3.bf16.msra.mxu1 %v5348_v16 }
 0x4f6   : > { %v2439_v18 = vpop.f32.mrf.mxu1 }
 0x4f7   : > { %v2440_v20 = vadd.f32 %v4521_v17, %v2439_v18 }
 0x4f8   : > { %v5045_v21 = vpop.f32.mrf.mxu1 }
 0x4f9   : > { %v2446_v22 = vmin.f32 %v2440_v20, 20.0  ;;  %vm2445_vm9 = vcmp.gt.f32.partialorder %v2440_v20, 20.0 }
 0x4fa   : > { %v2442_v23 = vpop.f32.mrf.mxu1 }
 0x4fb   : > { %v2447_v24 = vmul.f32 1.442695, %v2446_v22 }
 0x4fc   : > { %v5046_v25 = vpop.f32.mrf.mxu1 }
 0x4fd   : > { %5357 = vpow2.f32 %v2447_v24 }
 0x50a   : > { %v5358_v26 = vpop.eup %5357 }
 0x50b   : > { %v2449_v27 = vadd.f32 1.0, %v5358_v26  ;;  %v2452_v28 = vmul.f32 -0.5, %v5358_v26  ;;  %v2455_v19 = vand.u32 2147483647, %v5358_v26 }
 0x50d   : > { %5359 = vlog2.f32 %v2449_v27  ;;  %v2453_v29 = vadd.f32 1.0, %v2452_v28  ;;  %vm2456_vm8 = vcmp.lt.f32.partialorder %v2455_v19, 0.0004427343 }
 0x50f   : > { %v2454_v32 = vmul.f32 %v5358_v26, %v2453_v29 }
 0x51a   : > { %v5360_v30 = vpop.eup %5359 }
 0x51b   : > { %v2451_v31 = vmul.f32 0.6931472, %v5360_v30 }
 0x51d   : > { %v2457_v33 = vsel %vm2456_vm8, %v2454_v32, %v2451_v31 }
 0x51e   : > { %v2458_v34 = vsel %vm2445_vm9, %v2440_v20, %v2457_v33 }
 0x51f   : > { %v2459_v35 = vpack.c.bf16 %v2458_v34, %v2458_v34 }
 0x521   : > { %5056 = vmatmul.mubr.msk.bf16.vlgmr.msra.gmra.mxu1 %vm2344_vm6, %v2459_v35 }
 0x5e1   : > { %v2536_v37 = vpop.f32.mrf.mxu1 }
 0x5e2   : > { %v2537_v38 = vadd.f32 %v4523_v36, %v2536_v37 }
 0x5e3   : > { %v5057_v39 = vpop.f32.mrf.mxu1 }
 0x5e4   : > { %v2543_v40 = vmin.f32 %v2537_v38, 20.0  ;;  %vm2542_vm11 = vcmp.gt.f32.partialorder %v2537_v38, 20.0 }
 0x5e5   : > { %v2539_v41 = vpop.f32.mrf.mxu1 }
 0x5e6   : > { %v2544_v42 = vmul.f32 1.442695, %v2543_v40 }
 0x5e7   : > { %v5058_v43 = vpop.f32.mrf.mxu1 }
 0x5e8   : > { %5361 = vpow2.f32 %v2544_v42 }
 0x5f5   : > { %v5362_v44 = vpop.eup %5361 }
 0x5f6   : > { %v2546_v45 = vadd.f32 1.0, %v5362_v44  ;;  %v2549_v46 = vmul.f32 -0.5, %v5362_v44  ;;  %v2552_v48 = vand.u32 2147483647, %v5362_v44 }
 0x5f8   : > { %5363 = vlog2.f32 %v2546_v45  ;;  %v2550_v47 = vadd.f32 1.0, %v2549_v46  ;;  %vm2553_vm10 = vcmp.lt.f32.partialorder %v2552_v48, 0.0004427343 }
 0x5fa   : > { %v2551_v51 = vmul.f32 %v5362_v44, %v2550_v47 }
 0x605   : > { %v5364_v49 = vpop.eup %5363 }
 0x606   : > { %v2548_v50 = vmul.f32 0.6931472, %v5364_v49 }
 0x608   : > { %v2554_v52 = vsel %vm2553_vm10, %v2551_v51, %v2548_v50 }
 0x609   : > { %v2555_v53 = vsel %vm2542_vm11, %v2537_v38, %v2554_v52 }
 0x60a   : > { %2556 = vst [vmem:[#allocation3] sm:$0xff] %v2555_v53 }
 0x60b PF: > { %p4529_p12 = scmp.lt.s32.totalorder %s5970_s27, 1 }
 0x60d   : > { %2560 = sbr.rel (%p4529_p12) target bundleno = 2013 (0x7dd), region = 132 }
 0x612   : > { %v5365_v54 = vld [vmem:[%s6257_s10 + $0x78] sm:$0xff]   ;;  %v5369_v58 = vld [vmem:[%s6257_s10 + $0x70] sm:$0xff]   ;;  %v5373_v62 = vld [vmem:[%s6257_s10 + $0x68] sm:$0xff]  }
 0x613   : > { %v5366_v55 = vld [vmem:[%s6257_s10 + $0xf8] sm:$0xff]   ;;  %4865 = vmatprep.subr.bf16.mxu0 %v5365_v54  ;;  %v5370_v59 = vld [vmem:[%s6257_s10 + $0xf0] sm:$0xff]   ;;  %v5374_v63 = vld [vmem:[%s6257_s10 + $0xe8] sm:$0xff]  }
 0x614   : > { %v5367_v56 = vld [vmem:[%s6257_s10 + $0x38] sm:$0xff]   ;;  %4883 = vmatprep.subr.bf16.mxu1 %v5366_v55  ;;  %v5371_v60 = vld [vmem:[%s6257_s10 + $0x30] sm:$0xff]   ;;  %v5375_v0 = vld [vmem:[%s6257_s10 + $0x28] sm:$0xff]  }
 0x615   : > { %v5368_v57 = vld [vmem:[%s6257_s10 + $0xb8] sm:$0xff]   ;;  %4866 = vmatpush3.bf16.xpose.msra.mxu0 %v5367_v56  ;;  %v5372_v61 = vld [vmem:[%s6257_s10 + $0xb0] sm:$0xff]   ;;  %v5376_v1 = vld [vmem:[%s6257_s10 + $0xa8] sm:$0xff]  }
 0x616   : > { %4884 = vmatpush3.bf16.xpose.msra.mxu1 %v5368_v57  ;;  %4867 = vmatprep.subr.bf16.mxu0 %v5369_v58  ;;  %v5377_v2 = vld [vmem:[%s6257_s10 + $0x60] sm:$0xff]   ;;  %v5381_v6 = vld [vmem:[%s6257_s10 + $0x58] sm:$0xff]   ;;  %v2817_v10 = vld [vmem:[#allocation3] sm:$0xff] }
 0x617   : > { %4885 = vmatprep.subr.bf16.mxu1 %v5370_v59  ;;  %v5378_v3 = vld [vmem:[%s6257_s10 + $0xe0] sm:$0xff]   ;;  %v5382_v7 = vld [vmem:[%s6257_s10 + $0xd8] sm:$0xff]   ;;  %v5385_v11 = vld [vmem:[%s6257_s10 + $0x50] sm:$0xff]   ;;  %v6524_v12 = vpack.c.bf16 %v2817_v10, %v2817_v10 }
 0x618   : > { %v5379_v4 = vld [vmem:[%s6257_s10 + $0x20] sm:$0xff]   ;;  %v5383_v8 = vld [vmem:[%s6257_s10 + $0x18] sm:$0xff]   ;;  %v5386_v13 = vld [vmem:[%s6257_s10 + $0xd0] sm:$0xff]  }
 0x619   : > { %v5380_v5 = vld [vmem:[%s6257_s10 + $0xa0] sm:$0xff]   ;;  %v5384_v9 = vld [vmem:[%s6257_s10 + $0x98] sm:$0xff]   ;;  %4881 = vmatprep.mubr.bf16.mxu0 %v6524_v12  ;;  %4899 = vmatprep.mubr.bf16.mxu1 %v6524_v12  ;;  %v5387_v14 = vld [vmem:[%s6257_s10 + $0x10] sm:$0xff]  }
 0x61a   : > { %v5388_v15 = vld [vmem:[%s6257_s10 + $0x90] sm:$0xff]   ;;  %v5389_v16 = vld [vmem:[%s6257_s10 + $0x48] sm:$0xff]   ;;  %v5393_v21 = vld [vmem:[%s6257_s10 + $0x40] sm:$0xff]  }
 0x61b   : > { %v5390_v17 = vld [vmem:[%s6257_s10 + $0xc8] sm:$0xff]   ;;  %v5394_v22 = vld [vmem:[%s6257_s10 + $0xc0] sm:$0xff]   ;;  %v5397_v25 = vld [vmem:[%s6257_s10 + $0x178] sm:$0xff]  }
 0x61c   : > { %v5391_v18 = vld [vmem:[%s6257_s10 + $0x8] sm:$0xff]   ;;  %v5395_v23 = vld [vmem:[%s6257_s10] sm:$0xff]   ;;  %v5398_v26 = vld [vmem:[%s6257_s10 + $0x1f8] sm:$0xff]  }
 0x61d   : > { %4868 = vmatpush3.bf16.xpose.msra.mxu0 %v5371_v60  ;;  %v5392_v20 = vld [vmem:[%s6257_s10 + $0x88] sm:$0xff]   ;;  %v5396_v24 = vld [vmem:[%s6257_s10 + $0x80] sm:$0xff]   ;;  %v5399_v27 = vld [vmem:[%s6257_s10 + $0x138] sm:$0xff]  }
 0x61e   : > { %4886 = vmatpush3.bf16.xpose.msra.mxu1 %v5372_v61  ;;  %4869 = vmatprep.subr.bf16.mxu0 %v5373_v62  ;;  %v5400_v28 = vld [vmem:[%s6257_s10 + $0x1b8] sm:$0xff]   ;;  %v5401_v29 = vld [vmem:[%s6257_s10 + $0x170] sm:$0xff]   ;;  %v5405_v32 = vld [vmem:[%s6257_s10 + $0x168] sm:$0xff]  }
 0x61f   : > { %4887 = vmatprep.subr.bf16.mxu1 %v5374_v63  ;;  %v5402_v19 = vld [vmem:[%s6257_s10 + $0x1f0] sm:$0xff]   ;;  %v5406_v33 = vld [vmem:[%s6257_s10 + $0x1e8] sm:$0xff]   ;;  %v5409_v36 = vld [vmem:[%s6257_s10 + $0x160] sm:$0xff]  }
 0x620   : > { %v5403_v30 = vld [vmem:[%s6257_s10 + $0x130] sm:$0xff]   ;;  %v5407_v34 = vld [vmem:[%s6257_s10 + $0x128] sm:$0xff]   ;;  %v5410_v37 = vld [vmem:[%s6257_s10 + $0x1e0] sm:$0xff]  }
 0x621   : > { %v5404_v31 = vld [vmem:[%s6257_s10 + $0x1b0] sm:$0xff]   ;;  %v5408_v35 = vld [vmem:[%s6257_s10 + $0x1a8] sm:$0xff]   ;;  %v5411_v38 = vld [vmem:[%s6257_s10 + $0x120] sm:$0xff]  }
 0x622   : > { %v5412_v39 = vld [vmem:[%s6257_s10 + $0x1a0] sm:$0xff]   ;;  %v5413_v40 = vld [vmem:[%s6257_s10 + $0x158] sm:$0xff]   ;;  %v5417_v44 = vld [vmem:[%s6257_s10 + $0x150] sm:$0xff]  }
 0x623   : > { %v5414_v41 = vld [vmem:[%s6257_s10 + $0x1d8] sm:$0xff]   ;;  %v5418_v45 = vld [vmem:[%s6257_s10 + $0x1d0] sm:$0xff]   ;;  %v5421_v48 = vld [vmem:[%s6257_s10 + $0x148] sm:$0xff]  }
 0x624   : > { %v5415_v42 = vld [vmem:[%s6257_s10 + $0x118] sm:$0xff]   ;;  %v5419_v46 = vld [vmem:[%s6257_s10 + $0x110] sm:$0xff]   ;;  %v5422_v49 = vld [vmem:[%s6257_s10 + $0x1c8] sm:$0xff]  }
 0x625   : > { %4870 = vmatpush3.bf16.xpose.msra.mxu0 %v5375_v0  ;;  %v5416_v43 = vld [vmem:[%s6257_s10 + $0x198] sm:$0xff]   ;;  %v5420_v47 = vld [vmem:[%s6257_s10 + $0x190] sm:$0xff]   ;;  %v5423_v50 = vld [vmem:[%s6257_s10 + $0x108] sm:$0xff]  }
 0x626   : > { %4888 = vmatpush3.bf16.xpose.msra.mxu1 %v5376_v1  ;;  %4871 = vmatprep.subr.bf16.mxu0 %v5377_v2  ;;  %v5424_v51 = vld [vmem:[%s6257_s10 + $0x188] sm:$0xff]   ;;  %v5425_v52 = vld [vmem:[%s6257_s10 + $0x140] sm:$0xff]   ;;  %v5429_v56 = vld [vmem:[%s6257_s10 + $0x278] sm:$0xff]  }
 0x627   : > { %4889 = vmatprep.subr.bf16.mxu1 %v5378_v3  ;;  %v5426_v53 = vld [vmem:[%s6257_s10 + $0x1c0] sm:$0xff]   ;;  %v5430_v57 = vld [vmem:[%s6257_s10 + $0x2f8] sm:$0xff]   ;;  %v5433_v60 = vld [vmem:[%s6257_s10 + $0x270] sm:$0xff]  }
 0x628   : > { %v5427_v54 = vld [vmem:[%s6257_s10 + $0x100] sm:$0xff]   ;;  %v5431_v58 = vld [vmem:[%s6257_s10 + $0x238] sm:$0xff]   ;;  %v5434_v61 = vld [vmem:[%s6257_s10 + $0x2f0] sm:$0xff]  }
 0x629   : > { %v5428_v55 = vld [vmem:[%s6257_s10 + $0x180] sm:$0xff]   ;;  %v5432_v59 = vld [vmem:[%s6257_s10 + $0x2b8] sm:$0xff]   ;;  %v5435_v62 = vld [vmem:[%s6257_s10 + $0x230] sm:$0xff]  }
 0x62a   : > { %v5436_v63 = vld [vmem:[%s6257_s10 + $0x2b0] sm:$0xff]   ;;  %v5437_v0 = vld [vmem:[%s6257_s10 + $0x268] sm:$0xff]   ;;  %v5447_v10 = vld [vmem:[%s6257_s10 + $0x218] sm:$0xff]  }
 0x62b   : > { %v5438_v1 = vld [vmem:[%s6257_s10 + $0x2e8] sm:$0xff]  }
 0x62c   : > { %v5439_v2 = vld [vmem:[%s6257_s10 + $0x228] sm:$0xff]  }
 0x62d   : > { %4872 = vmatpush3.bf16.xpose.msra.mxu0 %v5379_v4  ;;  %v5440_v3 = vld [vmem:[%s6257_s10 + $0x2a8] sm:$0xff]   ;;  %v5441_v4 = vld [vmem:[%s6257_s10 + $0x260] sm:$0xff]  }
 0x62e   : > { %4890 = vmatpush3.bf16.xpose.msra.mxu1 %v5380_v5  ;;  %4873 = vmatprep.subr.bf16.mxu0 %v5381_v6  ;;  %v5442_v5 = vld [vmem:[%s6257_s10 + $0x2e0] sm:$0xff]  }
 0x62f   : > { %4891 = vmatprep.subr.bf16.mxu1 %v5382_v7  ;;  %v5443_v6 = vld [vmem:[%s6257_s10 + $0x220] sm:$0xff]  }
 0x630   : > { %v5444_v7 = vld [vmem:[%s6257_s10 + $0x2a0] sm:$0xff]  }
 0x635   : > { %4874 = vmatpush3.bf16.xpose.msra.mxu0 %v5383_v8  ;;  %v5445_v8 = vld [vmem:[%s6257_s10 + $0x258] sm:$0xff]  }
 0x636   : > { %4892 = vmatpush3.bf16.xpose.msra.mxu1 %v5384_v9  ;;  %4875 = vmatprep.subr.bf16.mxu0 %v5385_v11  ;;  %v5446_v9 = vld [vmem:[%s6257_s10 + $0x2d8] sm:$0xff]  }
 0x637   : > { %4893 = vmatprep.subr.bf16.mxu1 %v5386_v13  ;;  %v5448_v11 = vld [vmem:[%s6257_s10 + $0x298] sm:$0xff]   ;;  %v5449_v13 = vld [vmem:[%s6257_s10 + $0x250] sm:$0xff]  }
 0x63d   : > { %4876 = vmatpush3.bf16.xpose.msra.mxu0 %v5387_v14  ;;  %v5450_v14 = vld [vmem:[%s6257_s10 + $0x2d0] sm:$0xff]  }
 0x63e   : > { %4894 = vmatpush3.bf16.xpose.msra.mxu1 %v5388_v15  ;;  %4877 = vmatprep.subr.bf16.mxu0 %v5389_v16  ;;  %v5451_v15 = vld [vmem:[%s6257_s10 + $0x210] sm:$0xff]  }
 0x63f   : > { %4895 = vmatprep.subr.bf16.mxu1 %v5390_v17  ;;  %v5452_v16 = vld [vmem:[%s6257_s10 + $0x290] sm:$0xff]   ;;  %v5453_v17 = vld [vmem:[%s6257_s10 + $0x248] sm:$0xff]  }
 0x645   : > { %4878 = vmatpush3.bf16.xpose.msra.mxu0 %v5391_v18  ;;  %v5454_v18 = vld [vmem:[%s6257_s10 + $0x2c8] sm:$0xff]  }
 0x646   : > { %4896 = vmatpush3.bf16.xpose.msra.mxu1 %v5392_v20  ;;  %4879 = vmatprep.subr.bf16.mxu0 %v5393_v21  ;;  %v5455_v20 = vld [vmem:[%s6257_s10 + $0x208] sm:$0xff]  }
 0x647   : > { %4897 = vmatprep.subr.bf16.mxu1 %v5394_v22  ;;  %v5456_v21 = vld [vmem:[%s6257_s10 + $0x288] sm:$0xff]   ;;  %v5457_v22 = vld [vmem:[%s6257_s10 + $0x240] sm:$0xff]  }
 0x64d   : > { %4880 = vmatpush3.bf16.xpose.msra.mxu0 %v5395_v23  ;;  %v5458_v23 = vld [vmem:[%s6257_s10 + $0x2c0] sm:$0xff]  }
 0x64e   : > { %4898 = vmatpush3.bf16.xpose.msra.mxu1 %v5396_v24  ;;  %4901 = vmatprep.subr.bf16.mxu0 %v5397_v25  ;;  %v5459_v24 = vld [vmem:[%s6257_s10 + $0x200] sm:$0xff]  }
 0x64f   : > { %4919 = vmatprep.subr.bf16.mxu1 %v5398_v26  ;;  %v5460_v25 = vld [vmem:[%s6257_s10 + $0x280] sm:$0xff]   ;;  %v5461_v26 = vld [vmem:[%s6257_s10 + $0x378] sm:$0xff]  }
 0x654   : > { %4882 = vmatmul.mubr.bf16.vlgmr.msra.gmra.mxu0 %v6524_v12 }
 0x655   : > { %4900 = vmatmul.mubr.bf16.vlgmr.msra.gmra.mxu1 %v6524_v12  ;;  %4902 = vmatpush3.bf16.xpose.msra.mxu0 %v5399_v27  ;;  %v5462_v27 = vld [vmem:[%s6257_s10 + $0x3f8] sm:$0xff]  }
 0x656   : > { %4920 = vmatpush3.bf16.xpose.msra.mxu1 %v5400_v28  ;;  %4903 = vmatprep.subr.bf16.mxu0 %v5401_v29  ;;  %v5463_v28 = vld [vmem:[%s6257_s10 + $0x338] sm:$0xff]  }
 0x657   : > { %4921 = vmatprep.subr.bf16.mxu1 %v5402_v19  ;;  %4917 = vmatprep.mubr.bf16.mxu0 %v6524_v12  ;;  %v5464_v29 = vld [vmem:[%s6257_s10 + $0x3b8] sm:$0xff]   ;;  %v5465_v19 = vld [vmem:[%s6257_s10 + $0x370] sm:$0xff]  }
 0x658   : > { %4935 = vmatprep.mubr.bf16.mxu1 %v6524_v12 }
 0x65d   : > { %4904 = vmatpush3.bf16.xpose.msra.mxu0 %v5403_v30  ;;  %v5466_v30 = vld [vmem:[%s6257_s10 + $0x3f0] sm:$0xff]  }
 0x65e   : > { %4922 = vmatpush3.bf16.xpose.msra.mxu1 %v5404_v31  ;;  %4905 = vmatprep.subr.bf16.mxu0 %v5405_v32  ;;  %v5467_v31 = vld [vmem:[%s6257_s10 + $0x330] sm:$0xff]  }
 0x65f   : > { %4923 = vmatprep.subr.bf16.mxu1 %v5406_v33  ;;  %v5468_v32 = vld [vmem:[%s6257_s10 + $0x3b0] sm:$0xff]   ;;  %v5469_v33 = vld [vmem:[%s6257_s10 + $0x368] sm:$0xff]  }
 0x665   : > { %4906 = vmatpush3.bf16.xpose.msra.mxu0 %v5407_v34  ;;  %v5470_v34 = vld [vmem:[%s6257_s10 + $0x3e8] sm:$0xff]  }
 0x666   : > { %4924 = vmatpush3.bf16.xpose.msra.mxu1 %v5408_v35  ;;  %4907 = vmatprep.subr.bf16.mxu0 %v5409_v36  ;;  %v5471_v35 = vld [vmem:[%s6257_s10 + $0x328] sm:$0xff]  }
 0x667   : > { %4925 = vmatprep.subr.bf16.mxu1 %v5410_v37  ;;  %v5472_v36 = vld [vmem:[%s6257_s10 + $0x3a8] sm:$0xff]   ;;  %v5473_v37 = vld [vmem:[%s6257_s10 + $0x360] sm:$0xff]  }
 0x66d   : > { %4908 = vmatpush3.bf16.xpose.msra.mxu0 %v5411_v38  ;;  %v5474_v38 = vld [vmem:[%s6257_s10 + $0x3e0] sm:$0xff]  }
 0x66e   : > { %4926 = vmatpush3.bf16.xpose.msra.mxu1 %v5412_v39  ;;  %4909 = vmatprep.subr.bf16.mxu0 %v5413_v40  ;;  %v5475_v39 = vld [vmem:[%s6257_s10 + $0x320] sm:$0xff]  }
 0x66f   : > { %4927 = vmatprep.subr.bf16.mxu1 %v5414_v41  ;;  %v5476_v40 = vld [vmem:[%s6257_s10 + $0x3a0] sm:$0xff]   ;;  %v5477_v41 = vld [vmem:[%s6257_s10 + $0x358] sm:$0xff]  }
 0x675   : > { %4910 = vmatpush3.bf16.xpose.msra.mxu0 %v5415_v42  ;;  %v5478_v42 = vld [vmem:[%s6257_s10 + $0x3d8] sm:$0xff]  }
 0x676   : > { %4928 = vmatpush3.bf16.xpose.msra.mxu1 %v5416_v43  ;;  %4911 = vmatprep.subr.bf16.mxu0 %v5417_v44  ;;  %v5479_v43 = vld [vmem:[%s6257_s10 + $0x318] sm:$0xff]  }
 0x677   : > { %4929 = vmatprep.subr.bf16.mxu1 %v5418_v45  ;;  %v5480_v44 = vld [vmem:[%s6257_s10 + $0x398] sm:$0xff]   ;;  %v5481_v45 = vld [vmem:[%s6257_s10 + $0x350] sm:$0xff]  }
 0x67d   : > { %4912 = vmatpush3.bf16.xpose.msra.mxu0 %v5419_v46  ;;  %v5482_v46 = vld [vmem:[%s6257_s10 + $0x3d0] sm:$0xff]  }
 0x67e   : > { %4930 = vmatpush3.bf16.xpose.msra.mxu1 %v5420_v47  ;;  %4913 = vmatprep.subr.bf16.mxu0 %v5421_v48  ;;  %v5483_v47 = vld [vmem:[%s6257_s10 + $0x310] sm:$0xff]  }
 0x67f   : > { %4931 = vmatprep.subr.bf16.mxu1 %v5422_v49  ;;  %v5484_v48 = vld [vmem:[%s6257_s10 + $0x390] sm:$0xff]   ;;  %v5485_v49 = vld [vmem:[%s6257_s10 + $0x348] sm:$0xff]  }
 0x685   : > { %4914 = vmatpush3.bf16.xpose.msra.mxu0 %v5423_v50  ;;  %v5486_v50 = vld [vmem:[%s6257_s10 + $0x3c8] sm:$0xff]  }
 0x686   : > { %4932 = vmatpush3.bf16.xpose.msra.mxu1 %v5424_v51  ;;  %4915 = vmatprep.subr.bf16.mxu0 %v5425_v52  ;;  %v5487_v51 = vld [vmem:[%s6257_s10 + $0x308] sm:$0xff]  }
 0x687   : > { %4933 = vmatprep.subr.bf16.mxu1 %v5426_v53  ;;  %v5488_v52 = vld [vmem:[%s6257_s10 + $0x388] sm:$0xff]   ;;  %v5489_v53 = vld [vmem:[%s6257_s10 + $0x340] sm:$0xff]  }
 0x68d   : > { %4916 = vmatpush3.bf16.xpose.msra.mxu0 %v5427_v54  ;;  %v5490_v54 = vld [vmem:[%s6257_s10 + $0x3c0] sm:$0xff]  }
 0x68e   : > { %4934 = vmatpush3.bf16.xpose.msra.mxu1 %v5428_v55  ;;  %4937 = vmatprep.subr.bf16.mxu0 %v5429_v56  ;;  %v3919_v55 = vlaneseq  ;;  %v5491_v56 = vld [vmem:[%s6257_s10 + $0x300] sm:$0xff]  }
 0x68f   : > { %4955 = vmatprep.subr.bf16.mxu1 %v5430_v57 }
 0x690   : > { %v3920_v57 = vshrl.u32 %v3919_v55, 7 }
 0x694   : > { %4918 = vmatmul.mubr.bf16.vlgmr.msra.gmra.mxu0 %v6524_v12 }
 0x695   : > { %4936 = vmatmul.mubr.bf16.vlgmr.msra.gmra.mxu1 %v6524_v12  ;;  %4938 = vmatpush3.bf16.xpose.msra.mxu0 %v5431_v58  ;;  %v5492_v58 = vld [vmem:[%s6257_s10 + $0x380] sm:$0xff]  }
 0x696   : > { %4956 = vmatpush3.bf16.xpose.msra.mxu1 %v5432_v59  ;;  %4939 = vmatprep.subr.bf16.mxu0 %v5433_v60  ;;  %v6647_v59 = vsub.s32 0, %v3920_v57  ;;  %v3915_v60 = vld [vmem:[%s6272_s8] sm:$0xff] }
 0x697   : > { %4957 = vmatprep.subr.bf16.mxu1 %v5434_v61  ;;  %4953 = vmatprep.mubr.bf16.mxu0 %v6524_v12  ;;  %v6650_v61 = vsub.s32 2, %v3920_v57 }
 0x698   : > { %4971 = vmatprep.mubr.bf16.mxu1 %v6524_v12 }
 0x69d   : > { %4940 = vmatpush3.bf16.xpose.msra.mxu0 %v5435_v62  ;;  %v6652_v62 = vsub.s32 1, %v3920_v57 }
 0x69e   : > { %4958 = vmatpush3.bf16.xpose.msra.mxu1 %v5436_v63  ;;  %4941 = vmatprep.subr.bf16.mxu0 %v5437_v0  ;;  %v4015_v63 = vld [vmem:[%s6274_s17] sm:$0xff]  ;;  %v6655_v0 = vsub.s32 3, %v3920_v57 }
 0x69f   : > { %4959 = vmatprep.subr.bf16.mxu1 %v5438_v1  ;;  %v3922_v1 = vrot.slane %v3915_v60, %v6647_v59 }
 0x6a5   : > { %4942 = vmatpush3.bf16.xpose.msra.mxu0 %v5439_v2  ;;  %v3930_v2 = vrot.slane %v3915_v60, %v6650_v61 }
 0x6a6   : > { %4960 = vmatpush3.bf16.xpose.msra.mxu1 %v5440_v3  ;;  %4943 = vmatprep.subr.bf16.mxu0 %v5441_v4  ;;  %v4022_v3 = vrot.slane %v4015_v63, %v6647_v59  ;;  %v3926_v4 = vrot.slane %v3915_v60, %v6652_v62 }
 0x6a7   : > { %4961 = vmatprep.subr.bf16.mxu1 %v5442_v5 }
 0x6ad   : > { %4944 = vmatpush3.bf16.xpose.msra.mxu0 %v5443_v6  ;;  %v4030_v6 = vrot.slane %v4015_v63, %v6650_v61 }
 0x6ae   : > { %4962 = vmatpush3.bf16.xpose.msra.mxu1 %v5444_v7  ;;  %4945 = vmatprep.subr.bf16.mxu0 %v5445_v8  ;;  %v3934_v7 = vrot.slane %v3915_v60, %v6655_v0 }
 0x6af   : > { %4963 = vmatprep.subr.bf16.mxu1 %v5446_v9 }
 0x6b5   : > { %4946 = vmatpush3.bf16.xpose.msra.mxu0 %v5447_v10  ;;  %v4026_v10 = vrot.slane %v4015_v63, %v6652_v62 }
 0x6b6   : > { %4964 = vmatpush3.bf16.xpose.msra.mxu1 %v5448_v11  ;;  %4947 = vmatprep.subr.bf16.mxu0 %v5449_v13 }
 0x6b7   : > { %4965 = vmatprep.subr.bf16.mxu1 %v5450_v14  ;;  %v4034_v14 = vrot.slane %v4015_v63, %v6655_v0 }
 0x6bd   : > { %4948 = vmatpush3.bf16.xpose.msra.mxu0 %v5451_v15 }
 0x6be   : > { %4966 = vmatpush3.bf16.xpose.msra.mxu1 %v5452_v16  ;;  %4949 = vmatprep.subr.bf16.mxu0 %v5453_v17 }
 0x6bf   : > { %4967 = vmatprep.subr.bf16.mxu1 %v5454_v18 }
 0x6c5   : > { %4950 = vmatpush3.bf16.xpose.msra.mxu0 %v5455_v20 }
 0x6c6   : > { %4968 = vmatpush3.bf16.xpose.msra.mxu1 %v5456_v21  ;;  %4951 = vmatprep.subr.bf16.mxu0 %v5457_v22 }
 0x6c7   : > { %4969 = vmatprep.subr.bf16.mxu1 %v5458_v23 }
 0x6cd   : > { %4952 = vmatpush3.bf16.xpose.msra.mxu0 %v5459_v24 }
 0x6ce   : > { %4970 = vmatpush3.bf16.xpose.msra.mxu1 %v5460_v25  ;;  %4973 = vmatprep.subr.bf16.mxu0 %v5461_v26  ;;  %v6671_v26 = vsub.s32 4, %v3920_v57 }
 0x6cf   : > { %4991 = vmatprep.subr.bf16.mxu1 %v5462_v27  ;;  %v6673_v27 = vsub.s32 6, %v3920_v57 }
 0x6d4   : > { %4954 = vmatmul.mubr.bf16.vlgmr.msra.gmra.mxu0 %v6524_v12 }
 0x6d5   : > { %4972 = vmatmul.mubr.bf16.vlgmr.msra.gmra.mxu1 %v6524_v12  ;;  %4974 = vmatpush3.bf16.xpose.msra.mxu0 %v5463_v28  ;;  %v6675_v28 = vsub.s32 5, %v3920_v57 }
 0x6d6   : > { %4992 = vmatpush3.bf16.xpose.msra.mxu1 %v5464_v29  ;;  %4975 = vmatprep.subr.bf16.mxu0 %v5465_v19  ;;  %v6677_v29 = vsub.s32 7, %v3920_v57  ;;  %v3938_v19 = vrot.slane %v3915_v60, %v6671_v26 }
 0x6d7   : > { %4993 = vmatprep.subr.bf16.mxu1 %v5466_v30  ;;  %4989 = vmatprep.mubr.bf16.mxu0 %v6524_v12  ;;  %v3946_v30 = vrot.slane %v3915_v60, %v6673_v27 }
 0x6d8   : > { %5007 = vmatprep.mubr.bf16.mxu1 %v6524_v12 }
 0x6dd   : > { %4976 = vmatpush3.bf16.xpose.msra.mxu0 %v5467_v31  ;;  %v4038_v31 = vrot.slane %v4015_v63, %v6671_v26 }
 0x6de   : > { %4994 = vmatpush3.bf16.xpose.msra.mxu1 %v5468_v32  ;;  %4977 = vmatprep.subr.bf16.mxu0 %v5469_v33  ;;  %v3942_v32 = vrot.slane %v3915_v60, %v6675_v28 }
 0x6df   : > { %4995 = vmatprep.subr.bf16.mxu1 %v5470_v34  ;;  %v4046_v34 = vrot.slane %v4015_v63, %v6673_v27 }
 0x6e5   : > { %4978 = vmatpush3.bf16.xpose.msra.mxu0 %v5471_v35  ;;  %v3950_v35 = vrot.slane %v3915_v60, %v6677_v29 }
 0x6e6   : > { %4996 = vmatpush3.bf16.xpose.msra.mxu1 %v5472_v36  ;;  %4979 = vmatprep.subr.bf16.mxu0 %v5473_v37 }
 0x6e7   : > { %4997 = vmatprep.subr.bf16.mxu1 %v5474_v38  ;;  %v4042_v38 = vrot.slane %v4015_v63, %v6675_v28 }
 0x6ed   : > { %4980 = vmatpush3.bf16.xpose.msra.mxu0 %v5475_v39 }
 0x6ee   : > { %4998 = vmatpush3.bf16.xpose.msra.mxu1 %v5476_v40  ;;  %4981 = vmatprep.subr.bf16.mxu0 %v5477_v41  ;;  %v4050_v41 = vrot.slane %v4015_v63, %v6677_v29 }
 0x6ef   : > { %4999 = vmatprep.subr.bf16.mxu1 %v5478_v42 }
 0x6f5   : > { %4982 = vmatpush3.bf16.xpose.msra.mxu0 %v5479_v43 }
 0x6f6   : > { %5000 = vmatpush3.bf16.xpose.msra.mxu1 %v5480_v44  ;;  %4983 = vmatprep.subr.bf16.mxu0 %v5481_v45 }
 0x6f7   : > { %5001 = vmatprep.subr.bf16.mxu1 %v5482_v46 }
 0x6fd   : > { %4984 = vmatpush3.bf16.xpose.msra.mxu0 %v5483_v47 }
 0x6fe   : > { %5002 = vmatpush3.bf16.xpose.msra.mxu1 %v5484_v48  ;;  %4985 = vmatprep.subr.bf16.mxu0 %v5485_v49 }
 0x6ff   : > { %5003 = vmatprep.subr.bf16.mxu1 %v5486_v50 }
 0x705   : > { %4986 = vmatpush3.bf16.xpose.msra.mxu0 %v5487_v51 }
 0x706   : > { %5004 = vmatpush3.bf16.xpose.msra.mxu1 %v5488_v52  ;;  %4987 = vmatprep.subr.bf16.mxu0 %v5489_v53  ;;  %v3916_v53 = vld [vmem:[%s6272_s8 + $0x8] sm:$0xff] }
 0x707   : > { %5005 = vmatprep.subr.bf16.mxu1 %v5490_v54  ;;  %v4016_v54 = vld [vmem:[%s6274_s17 + $0x8] sm:$0xff]  ;;  %v3954_v55 = vrot.slane %v3916_v53, %v6647_v59 }
 0x708   : > { %v4054_v57 = vrot.slane %v4016_v54, %v6647_v59  ;;  %v4062_v63 = vrot.slane %v4016_v54, %v6650_v61 }
 0x70d   : > { %4988 = vmatpush3.bf16.xpose.msra.mxu0 %v5491_v56  ;;  %v3962_v56 = vrot.slane %v3916_v53, %v6650_v61 }
 0x70e   : > { %5006 = vmatpush3.bf16.xpose.msra.mxu1 %v5492_v58  ;;  %v3958_v58 = vrot.slane %v3916_v53, %v6652_v62 }
 0x714   : > { %v3621_v5 = vpop.f32.mrf.mxu0  ;;  %4990 = vmatmul.mubr.bf16.vlgmr.msra.gmra.mxu0 %v6524_v12 }
 0x715   : > { %v3999_v8 = vmul.f32 %v3922_v1, %v3621_v5  ;;  %v3662_v9 = vpop.f32.mrf.mxu1  ;;  %5008 = vmatmul.mubr.bf16.vlgmr.msra.gmra.mxu1 %v6524_v12  ;;  %v3966_v1 = vrot.slane %v3916_v53, %v6655_v0 }
 0x716   : > { %v4001_v11 = vmul.f32 %v3930_v2, %v3662_v9  ;;  %v3623_v13 = vpop.f32.mrf.mxu0 }
 0x717   : > { %v4099_v15 = vadd.f32 %v4022_v3, %v3999_v8  ;;  %v4000_v16 = vmul.f32 %v3926_v4, %v3623_v13  ;;  %v3664_v17 = vpop.f32.mrf.mxu1  ;;  %v4058_v4 = vrot.slane %v4016_v54, %v6652_v62 }
 0x718   : > { %v4101_v18 = vadd.f32 %v4030_v6, %v4001_v11  ;;  %v4002_v20 = vmul.f32 %v3934_v7, %v3664_v17  ;;  %v3625_v21 = vpop.f32.mrf.mxu0  ;;  %v4066_v7 = vrot.slane %v4016_v54, %v6655_v0  ;;  %v3970_v17 = vrot.slane %v3916_v53, %v6671_v26 }
 0x719   : > { %4115 = vst [vmem:[%s6276_s5] sm:$0xff] %v4099_v15  ;;  %v4100_v22 = vadd.f32 %v4026_v10, %v4000_v16  ;;  %v3666_v23 = vpop.f32.mrf.mxu1  ;;  %v4070_v0 = vrot.slane %v4016_v54, %v6671_v26 }
 0x71a   : > { %4117 = vst [vmem:[%s6276_s5 + $0x10] sm:$0xff] %v4101_v18  ;;  %v4102_v24 = vadd.f32 %v4034_v14, %v4002_v20  ;;  %v3626_v12 = vpop.f32.mrf.mxu0  ;;  %v3978_v18 = vrot.slane %v3916_v53, %v6673_v27  ;;  %v3974_v20 = vrot.slane %v3916_v53, %v6675_v28  ;;  %v3982_v23 = vrot.slane %v3916_v53, %v6677_v29 }
 0x71b   : > { %4116 = vst [vmem:[%s6276_s5 + $0x8] sm:$0xff] %v4100_v22  ;;  %v3667_v25 = vpop.f32.mrf.mxu1  ;;  %v4078_v22 = vrot.slane %v4016_v54, %v6673_v27 }
 0x71c   : > { %4118 = vst [vmem:[%s6276_s5 + $0x18] sm:$0xff] %v4102_v24  ;;  %v4074_v25 = vrot.slane %v4016_v54, %v6675_v28 }
 0x754   : > { %v3703_v33 = vpop.f32.mrf.mxu0 }
 0x755   : > { %v4003_v36 = vmul.f32 %v3938_v19, %v3703_v33  ;;  %v3744_v37 = vpop.f32.mrf.mxu1 }
 0x756   : > { %v4005_v39 = vmul.f32 %v3946_v30, %v3744_v37  ;;  %v3705_v40 = vpop.f32.mrf.mxu0 }
 0x757   : > { %v4103_v42 = vadd.f32 %v4038_v31, %v4003_v36  ;;  %v4004_v43 = vmul.f32 %v3942_v32, %v3705_v40  ;;  %v3746_v44 = vpop.f32.mrf.mxu1  ;;  %v4082_v31 = vrot.slane %v4016_v54, %v6677_v29 }
 0x758   : > { %v4105_v45 = vadd.f32 %v4046_v34, %v4005_v39  ;;  %v4006_v46 = vmul.f32 %v3950_v35, %v3746_v44  ;;  %v3707_v47 = vpop.f32.mrf.mxu0 }
 0x759   : > { %4119 = vst [vmem:[%s6276_s5 + $0x20] sm:$0xff] %v4103_v42  ;;  %v4104_v48 = vadd.f32 %v4042_v38, %v4004_v43  ;;  %v3748_v49 = vpop.f32.mrf.mxu1 }
 0x75a   : > { %4121 = vst [vmem:[%s6276_s5 + $0x30] sm:$0xff] %v4105_v45  ;;  %v4106_v50 = vadd.f32 %v4050_v41, %v4006_v46  ;;  %v3708_v51 = vpop.f32.mrf.mxu0 }
 0x75b   : > { %4120 = vst [vmem:[%s6276_s5 + $0x28] sm:$0xff] %v4104_v48  ;;  %v3749_v52 = vpop.f32.mrf.mxu1 }
 0x75c   : > { %4122 = vst [vmem:[%s6276_s5 + $0x38] sm:$0xff] %v4106_v50 }
 0x794   : > { %v3785_v60 = vpop.f32.mrf.mxu0 }
 0x795   : > { %v4007_v2 = vmul.f32 %v3954_v55, %v3785_v60  ;;  %v3826_v3 = vpop.f32.mrf.mxu1 }
 0x796   : > { %v4009_v5 = vmul.f32 %v3962_v56, %v3826_v3  ;;  %v3787_v6 = vpop.f32.mrf.mxu0 }
 0x797   : > { %v4107_v59 = vadd.f32 %v4054_v57, %v4007_v2  ;;  %v4008_v8 = vmul.f32 %v3958_v58, %v3787_v6  ;;  %v3828_v9 = vpop.f32.mrf.mxu1 }
 0x798   : > { %v4109_v10 = vadd.f32 %v4062_v63, %v4009_v5  ;;  %v4010_v11 = vmul.f32 %v3966_v1, %v3828_v9  ;;  %v3789_v13 = vpop.f32.mrf.mxu0 }
 0x799   : > { %4123 = vst [vmem:[%s6276_s5 + $0x40] sm:$0xff] %v4107_v59  ;;  %v4108_v61 = vadd.f32 %v4058_v4, %v4008_v8  ;;  %v3830_v14 = vpop.f32.mrf.mxu1 }
 0x79a   : > { %4125 = vst [vmem:[%s6276_s5 + $0x50] sm:$0xff] %v4109_v10  ;;  %v4110_v15 = vadd.f32 %v4066_v7, %v4010_v11  ;;  %v3790_v16 = vpop.f32.mrf.mxu0 }
 0x79b   : > { %4124 = vst [vmem:[%s6276_s5 + $0x48] sm:$0xff] %v4108_v61  ;;  %v3831_v62 = vpop.f32.mrf.mxu1 }
 0x79c   : > { %4126 = vst [vmem:[%s6276_s5 + $0x58] sm:$0xff] %v4110_v15 }
 0x7d4   : > { %v3867_v21 = vpop.f32.mrf.mxu0 }
 0x7d5   : > { %v4011_v24 = vmul.f32 %v3970_v17, %v3867_v21  ;;  %v3908_v12 = vpop.f32.mrf.mxu1 }
 0x7d6   : > { %v4013_v19 = vmul.f32 %v3978_v18, %v3908_v12  ;;  %v3869_v30 = vpop.f32.mrf.mxu0 }
 0x7d7   : > { %v4111_v26 = vadd.f32 %v4070_v0, %v4011_v24  ;;  %v4012_v32 = vmul.f32 %v3974_v20, %v3869_v30  ;;  %v3910_v33 = vpop.f32.mrf.mxu1 }
 0x7d8   : > { %v4113_v34 = vadd.f32 %v4078_v22, %v4013_v19  ;;  %v4014_v35 = vmul.f32 %v3982_v23, %v3910_v33  ;;  %v3871_v36 = vpop.f32.mrf.mxu0 }
 0x7d9   : > { %4127 = vst [vmem:[%s6276_s5 + $0x60] sm:$0xff] %v4111_v26  ;;  %v4112_v27 = vadd.f32 %v4074_v25, %v4012_v32  ;;  %v3912_v37 = vpop.f32.mrf.mxu1 }
 0x7da   : > { %4129 = vst [vmem:[%s6276_s5 + $0x70] sm:$0xff] %v4113_v34  ;;  %v4114_v38 = vadd.f32 %v4082_v31, %v4014_v35  ;;  %v3872_v39 = vpop.f32.mrf.mxu0 }
 0x7db   : > { %4128 = vst [vmem:[%s6276_s5 + $0x68] sm:$0xff] %v4112_v27  ;;  %v3913_v28 = vpop.f32.mrf.mxu1 }
 0x7dc   : > { %4130 = vst [vmem:[%s6276_s5 + $0x78] sm:$0xff] %v4114_v38 }
 0x7dd PF: > { %s6869_s27 = sld [smem:[#allocation28_spill]]  ;;  %s4667_s10 = sshll.u32 %s6887_s11, 11 }
 0x7de   : > { %s6870_s30 = sld [smem:[#allocation45_spill]]  ;;  %s4149_s28 = sshll.u32 %s6276_s5, 4  ;;  %s4150_s28 = int_to_ptr.vmem [resolvable:$true] %s4149_s28 }
 0x7df   : > { %s4132_s0 = scalar_lea.sflag [#allocation6], %s6254_s9  ;;  %s5733_s29 = scalar_lea.vmem %s4150_s28, 2048 }
 0x7e0   : > { %p5734_p10 = scmp.ne.s32.totalorder %s4150_s28, %s5733_s29  ;;  %s5853_s12 = smov [#allocation19]  }
 0x7e1   : > { %s5737_s21 = sshll.u32 %s5853_s12, 4  ;;  %s5738_s21 = int_to_ptr.vmem [resolvable:$false] %s5737_s21 }
 0x7e2   : > { %s5739_s13 = scalar_lea.vmem %s5738_s21, 4096  ;;  %p5740_p1 = scmp.lt.s32.totalorder %s4150_s28, %s5738_s21 }
 0x7e3   : > { %p6871_p0 = scmp.ne.s32.totalorder %s6869_s27, 0  ;;  %p5741_p5 = scmp.lt.s32.totalorder %s5739_s13, %s5733_s29 }
 0x7e4   : > { %s4147_s26 = scalar_lea.hbm %s6870_s30, %s4667_s10 }
 0x7e5   : > { %p5735_p3 = pnand %p5734_p10, %p6871_p0  ;;  %p5742_p6 = por %p5741_p5, %p5740_p1 }
 0x7e7   : > { %p5736_p13 = pneg %p5735_p3 }
 0x7e9   : > { %p5743_p11 = pnand %p5742_p6, %p5736_p13 }
 0x7eb   : > { %5746 = shalt.err (!%p5743_p11)
}
 0x7ec   : > { %s5747_s11 = scalar_lea.hbm %s4147_s26, 2048  ;;  %s5751_s3 = scalar_lea.hbm %s6870_s30, 2048 }
 0x7ed   : > { %p5748_p8 = scmp.ne.s32.totalorder %s4147_s26, %s5747_s11  ;;  %p5752_p9 = scmp.lt.s32.totalorder %s4147_s26, %s6870_s30 }
 0x7ee   : > { %p5753_p7 = scmp.lt.s32.totalorder %s5751_s3, %s5747_s11 }
 0x7ef   : > { %p5749_p4 = pnand %p5748_p8, %p6871_p0 }
 0x7f0   : > { %p5754_p12 = por %p5753_p7, %p5752_p9 }
 0x7f1   : > { %p5750_p2 = pneg %p5749_p4 }
 0x7f3   : > { %p5755_p10 = pnand %p5754_p12, %p5750_p2 }
 0x7f5   : > { %5758 = shalt.err (!%p5755_p10)
}
 0x7f6   : > { %5089 = dma.vmem_to_hbm [thread:$0]  (%p6871_p0), %s4150_s28, 2048, %s4147_s26, %s4132_s0  }
 0x7f7 PF: > { %s6872_s4 = sld [smem:[#allocation26_spill]]  ;;  %p6875_p13 = scmp.ge.s32.totalorder %s5837_s24, 2 }
 0x7f8   : > { %s6873_s1 = sld [smem:[#allocation29_spill]] }
 0x7fd   : > { %s4161_s23 = sand.u32 1, %s6872_s4  }
 0x7fe   : > { %p6874_p3 = scmp.ne.s32.totalorder %s6873_s1, 0  ;;  %s4162_s18 = scalar_lea.sflag [#allocation6], %s4161_s23 }
 0x800   : > { %p5121_p1 = pnand %p6875_p13, %p6874_p3 }
 0x802   : > { %p5122_p5 = pneg %p5121_p1 }
 0x804   : > { %5808 = dma.done.wait (%p5122_p5), %s4162_s18, 2048  }
 0x805   : > { %5810 = vsyncadd (%p5122_p5), %s4162_s18, 4294965248  ;;  %s6876_s10 = sld [smem:[#allocation27_spill]]  ;;  %p34_p0 = scmp.ge.s32.totalorder %s6134_s15, 4  }
 0x806   : > { %s6877_s23 = sld [smem:[#allocation30_spill]]  ;;  %s6878_s18 = smov %s5817_s19 }
 0x807   : > { %s6879_s19 = smov %s5821_s20  ;;  %s6880_s20 = smov %s6171_s7 }
 0x808   : > { %s6881_s21 = smov %s5829_s22  ;;  %s6883_s24 = smov %s6134_s15 }
 0x809   :  { %36 = sbr.rel (!%p34_p0) target bundleno = 28 (0x1c), region = 193 }
 0x80b   : > { %s6882_s22 = smov %s6876_s10 }
 0x80e   :  { %4167 = vsyncpa [#allocation5], 1 }
 0x80f   :  { %4169 = vsyncpa [#allocation5 + $0x1], 1 }
 0x810   :  { %4170 = vsyncpa [#allocation8], 1 }
 0x811   :  { %4171 = vsyncpa [#allocation11], 1 }
 0x812   :  { %4172 = vsyncpa [#allocation14], 1 }
 0x813   :  { %4173 = vsyncpa [#allocation17], 1 }
 0x814   :  { %4175 = vsyncpa [#allocation17 + $0x1], 1 }
 0x815   :  { %4176 = vsyncpa [#allocation6], 1 }
 0x816   :  { %4178 = vsyncpa [#allocation6 + $0x1], 1 }

</bundles_post_ra>
